<compile_context>
chip_gen: v7x
topology: tpu7x:2x2x1
jax: 0.10.0
libtpu: 0.0.40
codegen_flags: <defaults>
</compile_context>

<pallas_src>
import jax
import jax.numpy as jnp
from jax import lax
from jax.experimental import pallas as pl
from jax.experimental.pallas import tpu as pltpu

# Exact f32 on the MXU so the self-test can use a tight tolerance.
# TODO(synk): for production, feed bf16 weights/activations (f32 accumulation)
# and batch many sequences so M approaches 128 (v5e) / 256 (v6e, v7x).
_MATMUL_PRECISION = jax.lax.Precision.HIGHEST


def _rnn_seq_kernel(x_ref, h0_ref, wx_ref, wh_ref, b_ref, out_ref, hT_ref, h_scr):
    """Processes t_blk timesteps of the RNN per grid step.

    x_ref  : (t_blk, B, I)  inputs for this time block
    h0_ref : (B, H)         initial hidden state (read only at grid step 0)
    wx_ref : (I, H+O)       fused [W1 | W2] rows multiplying x
    wh_ref : (H, H+O)       fused [W1 | W2] rows multiplying h
    b_ref  : (1, H+O)       fused [b1 | b2]
    out_ref: (t_blk, B, O)  per-step log-softmax outputs
    hT_ref : (B, H)         final hidden state (written at last grid step)
    h_scr  : (B, H)         VMEM scratch carrying the hidden state across grid steps
    """
    tb = pl.program_id(0)

    # Initialize the VMEM-resident hidden carry from h0 on the first block.
    @pl.when(tb == 0)
    def _():
        h_scr[...] = h0_ref[...]

    wx = wx_ref[...]                      # weights stay VMEM-resident for the whole grid
    wh = wh_ref[...]
    H = wh.shape[0]
    Bp = x_ref.shape[1]
    # Hoist the bias broadcast out of the (unrolled) time loop.
    bias = jnp.broadcast_to(b_ref[...], (Bp, b_ref.shape[1]))

    def step(i, h):
        x = x_ref[i]                      # (B, I)
        # Fused [linear1 | linear2] on the implicit concatenation [x ; h]:
        #   y = [x ; h] @ [W1 | W2] + [b1 | b2]    (two MXU pushes, f32 accumulate)
        y = (jnp.dot(x, wx, preferred_element_type=jnp.float32,
                     precision=_MATMUL_PRECISION)
             + jnp.dot(h, wh, preferred_element_type=jnp.float32,
                       precision=_MATMUL_PRECISION)
             + bias)
        h_new = y[:, :H]                  # linear1(combined)
        logits = y[:, H:]                 # linear2(combined)

        # Numerically stable LogSoftmax over the feature axis (dim=1).
        m = jnp.max(logits, axis=-1, keepdims=True)
        shifted = logits - m
        lse = jnp.log(jnp.sum(jnp.exp(shifted), axis=-1, keepdims=True))
        out_ref[i] = (shifted - lse).astype(out_ref.dtype)
        return h_new

    h = lax.fori_loop(0, x_ref.shape[0], step, h_scr[...], unroll=True)
    h_scr[...] = h

    @pl.when(tb == pl.num_programs(0) - 1)
    def _():
        hT_ref[...] = h.astype(hT_ref.dtype)


def rnn_sequence(xs, h0, wx, wh, b, *, t_blk=None):
    """Run the RNN over a whole sequence in one pallas_call.

    xs: (T, B, I), h0: (B, H), wx: (I, H+O), wh: (H, H+O), b: (1, H+O).
    Returns (log_probs (T, B, O), final_hidden (B, H)).
    """
    T, B, I = xs.shape
    H = wh.shape[0]
    HO = b.shape[1]
    O = HO - H
    assert wx.shape == (I, HO) and wh.shape == (H, HO) and h0.shape == (B, H)

    # Pad batch to the f32 sublane tile (8) so vregs / MXU rows aren't mostly padding.
    Bp = max(8, -(-B // 8) * 8)
    if Bp != B:
        xs = jnp.pad(xs, ((0, 0), (0, Bp - B), (0, 0)))
        h0 = jnp.pad(h0, ((0, Bp - B), (0, 0)))

    # Process t_blk timesteps per grid step (unrolled inside the kernel).
    if t_blk is None:
        t_blk = max(d for d in range(1, min(T, 8) + 1) if T % d == 0)
    assert T % t_blk == 0, "t_blk must divide T"
    n_blk = T // t_blk

    cost = pl.CostEstimate(
        flops=2 * T * Bp * (I + H) * HO,
        transcendentals=T * Bp * (O + 1),
        bytes_accessed=4 * (xs.size + h0.size + wx.size + wh.size + b.size
                            + T * Bp * O + Bp * H),
    )

    grid_spec = pltpu.PrefetchScalarGridSpec(
        num_scalar_prefetch=0,
        grid=(n_blk,),
        in_specs=[
            pl.BlockSpec((t_blk, Bp, I), lambda t: (t, 0, 0)),  # x: streamed over time
            pl.BlockSpec((Bp, H), lambda t: (0, 0)),            # h0: fetched once
            pl.BlockSpec((I, HO), lambda t: (0, 0)),            # Wx: fetched once, resident
            pl.BlockSpec((H, HO), lambda t: (0, 0)),            # Wh: fetched once, resident
            pl.BlockSpec((1, HO), lambda t: (0, 0)),            # bias: fetched once
        ],
        out_specs=(
            pl.BlockSpec((t_blk, Bp, O), lambda t: (t, 0, 0)),  # per-step log-probs
            pl.BlockSpec((Bp, H), lambda t: (0, 0)),            # final hidden
        ),
        scratch_shapes=[pltpu.VMEM((Bp, H), jnp.float32)],      # carried hidden state
    )

    out, hT = pl.pallas_call(
        _rnn_seq_kernel,
        out_shape=(jax.ShapeDtypeStruct((T, Bp, O), jnp.float32),
                   jax.ShapeDtypeStruct((Bp, H), jnp.float32)),
        grid_spec=grid_spec,
        compiler_params=pltpu.CompilerParams(dimension_semantics=("arbitrary",)),
        cost_estimate=cost,
    )(xs, h0, wx, wh, b)

    return out[:, :B], hT[:B]


def rnn_forward(x, h, wx, wh, b):
    """Single-step API matching RNN.forward(input, hidden) -> (output, hidden)."""
    out, h_new = rnn_sequence(x[None], h, wx, wh, b)
    return out[0], h_new


def init_params(key, input_size, hidden_size, output_size):
    """nn.Linear-style init: U(-1/sqrt(fan_in), 1/sqrt(fan_in)); weights transposed."""
    fan_in = input_size + hidden_size
    bound = 1.0 / jnp.sqrt(jnp.float32(fan_in))
    k1, k2, k3, k4 = jax.random.split(key, 4)
    w1 = jax.random.uniform(k1, (fan_in, hidden_size), jnp.float32, -bound, bound)
    b1 = jax.random.uniform(k2, (1, hidden_size), jnp.float32, -bound, bound)
    w2 = jax.random.uniform(k3, (fan_in, output_size), jnp.float32, -bound, bound)
    b2 = jax.random.uniform(k4, (1, output_size), jnp.float32, -bound, bound)
    return w1, b1, w2, b2


def fuse_params(w1, b1, w2, b2, input_size):
    """Fuse linear1/linear2 into one matmul and split by x-rows / h-rows."""
    W = jnp.concatenate([w1, w2], axis=1)   # (I+H, H+O)
    b = jnp.concatenate([b1, b2], axis=1)   # (1, H+O)
    return W[:input_size], W[input_size:], b


if __name__ == "__main__":
    T = 8
    batch = 2
    input_size, hidden_size, output_size = 16, 32, 10

    key = jax.random.PRNGKey(0)
    kp, kx = jax.random.split(key)

    w1, b1, w2, b2 = init_params(kp, input_size, hidden_size, output_size)
    wx, wh, b = fuse_params(w1, b1, w2, b2, input_size)

    xs = jax.random.normal(kx, (T, batch, input_size), jnp.float32)
    h0 = jnp.zeros((batch, hidden_size), jnp.float32)  # initHidden()

    # Fused-sequence kernel: one pallas_call for all T steps (t_blk=4 -> grid=(2,),
    # exercising both the unrolled inner loop and the cross-grid hidden carry).
    outs, hT = rnn_sequence(xs, h0, wx, wh, b, t_blk=4)
    jax.block_until_ready((outs, hT))

    # Reference: the original module semantics (concat + two linears + LogSoftmax),
    # stepped in plain JAX.
    h = h0
    ref_outs = []
    for t in range(T):
        combined = jnp.concatenate([xs[t], h], axis=1)
        new_h = jnp.dot(combined, w1, precision=_MATMUL_PRECISION) + b1
        logits = jnp.dot(combined, w2, precision=_MATMUL_PRECISION) + b2
        ref_outs.append(jax.nn.log_softmax(logits, axis=1))
        h = new_h
    ref_outs = jnp.stack(ref_outs)

    assert outs.shape == (T, batch, output_size)
    assert hT.shape == (batch, hidden_size)
    assert jnp.allclose(outs, ref_outs, atol=1e-4, rtol=1e-4), "log-softmax output mismatch"
    assert jnp.allclose(hT, h, atol=1e-4, rtol=1e-4), "final hidden mismatch"

    # Single-step API parity with RNN.forward(input, hidden).
    out1, h1 = rnn_forward(xs[0], h0, wx, wh, b)
    jax.block_until_ready((out1, h1))
    assert jnp.allclose(out1, ref_outs[0], atol=1e-4, rtol=1e-4), "single-step output mismatch"

    print("KERNEL_OK")
</pallas_src>

<mosaic_0001>
module attributes {stable_mosaic.version = 11 : i64} {
  func.func @_rnn_seq_kernel(%arg0: i32, %arg1: memref<4x8x16xf32, #tpu.memory_space<vmem>>, %arg2: memref<8x32xf32, #tpu.memory_space<vmem>>, %arg3: memref<16x42xf32, #tpu.memory_space<vmem>>, %arg4: memref<32x42xf32, #tpu.memory_space<vmem>>, %arg5: memref<1x42xf32, #tpu.memory_space<vmem>>, %arg6: memref<4x8x10xf32, #tpu.memory_space<vmem>>, %arg7: memref<8x32xf32, #tpu.memory_space<vmem>>, %arg8: memref<8x32xf32, #tpu.memory_space<vmem>>) attributes {dimension_semantics = [#tpu.dimension_semantics<arbitrary>], iteration_bounds = array<i64: 2>, scalar_prefetch = 0 : i64, scratch_operands = 1 : i64, tpu.core_type = #tpu.core_type<tc>, window_params = [{transform_indices = @transform_0, window_bounds = array<i64: 4, 8, 16>}, {pipeline_mode = #tpu.pipeline_mode<synchronous>, transform_indices = @transform_1, window_bounds = array<i64: 8, 32>}, {pipeline_mode = #tpu.pipeline_mode<synchronous>, transform_indices = @transform_2, window_bounds = array<i64: 16, 42>}, {pipeline_mode = #tpu.pipeline_mode<synchronous>, transform_indices = @transform_3, window_bounds = array<i64: 32, 42>}, {pipeline_mode = #tpu.pipeline_mode<synchronous>, transform_indices = @transform_4, window_bounds = array<i64: 1, 42>}, {transform_indices = @transform_5, window_bounds = array<i64: 4, 8, 10>}, {pipeline_mode = #tpu.pipeline_mode<synchronous>, transform_indices = @transform_6, window_bounds = array<i64: 8, 32>}]} {
    %c0_i32 = arith.constant 0 : i32
    %0 = arith.cmpi eq, %arg0, %c0_i32 : i32
    %1 = arith.extui %0 : i1 to i32
    %c0_i32_0 = arith.constant 0 : i32
    %2 = arith.cmpi ne, %1, %c0_i32_0 : i32
    scf.if %2 {
      %c0_44 = arith.constant 0 : index
      %c0_45 = arith.constant 0 : index
      %105 = vector.load %arg2[%c0_44, %c0_45] : memref<8x32xf32, #tpu.memory_space<vmem>>, vector<8x32xf32>
      %c0_46 = arith.constant 0 : index
      %c0_47 = arith.constant 0 : index
      %106 = vector.load %arg8[%c0_46, %c0_47] : memref<8x32xf32, #tpu.memory_space<vmem>>, vector<8x32xf32>
      tpu.vector_store %arg8[%c0_46, %c0_47], %105 {strides = array<i32>} : memref<8x32xf32, #tpu.memory_space<vmem>>, vector<8x32xf32>,
    } else {
    }
    %c0 = arith.constant 0 : index
    %c0_1 = arith.constant 0 : index
    %3 = vector.load %arg3[%c0, %c0_1] : memref<16x42xf32, #tpu.memory_space<vmem>>, vector<16x42xf32>
    %c0_2 = arith.constant 0 : index
    %c0_3 = arith.constant 0 : index
    %4 = vector.load %arg4[%c0_2, %c0_3] : memref<32x42xf32, #tpu.memory_space<vmem>>, vector<32x42xf32>
    %c0_4 = arith.constant 0 : index
    %c0_5 = arith.constant 0 : index
    %5 = vector.load %arg5[%c0_4, %c0_5] : memref<1x42xf32, #tpu.memory_space<vmem>>, vector<1x42xf32>
    %6 = vector.shape_cast %5 : vector<1x42xf32> to vector<1x42xf32>
    %7 = vector.broadcast %6 : vector<1x42xf32> to vector<8x42xf32>
    %c0_6 = arith.constant 0 : index
    %c0_7 = arith.constant 0 : index
    %8 = vector.load %arg8[%c0_6, %c0_7] : memref<8x32xf32, #tpu.memory_space<vmem>>, vector<8x32xf32>
    %c0_i32_8 = arith.constant 0 : i32
    %9 = arith.index_cast %c0_i32_8 : i32 to index
    %c0_9 = arith.constant 0 : index
    %c0_10 = arith.constant 0 : index
    %10 = vector.load %arg1[%9, %c0_9, %c0_10] : memref<4x8x16xf32, #tpu.memory_space<vmem>>, vector<1x8x16xf32>
    %11 = vector.shape_cast %10 : vector<1x8x16xf32> to vector<8x16xf32>
    %cst = arith.constant dense<0.000000e+00> : vector<8x42xf32>
    %12 = tpu.matmul %11, %3, %cst {dimension_numbers = #tpu.dot_dimension_numbers<[1], [0], [0], [1], [0, 0, 1, 1], [], []>, precision = #tpu.contract_precision<fp32>} : vector<8x16xf32>, vector<16x42xf32>, vector<8x42xf32> -> vector<8x42xf32>
    %cst_11 = arith.constant dense<0.000000e+00> : vector<8x42xf32>
    %13 = tpu.matmul %8, %4, %cst_11 {dimension_numbers = #tpu.dot_dimension_numbers<[1], [0], [0], [1], [0, 0, 1, 1], [], []>, precision = #tpu.contract_precision<fp32>} : vector<8x32xf32>, vector<32x42xf32>, vector<8x42xf32> -> vector<8x42xf32>
    %14 = arith.addf %12, %13 : vector<8x42xf32>
    %15 = arith.addf %14, %7 : vector<8x42xf32>
    %16 = vector.extract_strided_slice %15 {offsets = [0, 0], sizes = [8, 32], strides = [1, 1]} : vector<8x42xf32> to vector<8x32xf32>
    %17 = vector.extract_strided_slice %15 {offsets = [0, 32], sizes = [8, 10], strides = [1, 1]} : vector<8x42xf32> to vector<8x10xf32>
    %cst_12 = arith.constant dense<0xFF800000> : vector<8xf32>
    %18 = vector.multi_reduction <maximumf>, %17, %cst_12 [1] : vector<8x10xf32> to vector<8xf32>
    %19 = vector.shape_cast %18 : vector<8xf32> to vector<8x1xf32>
    %20 = vector.broadcast %19 : vector<8x1xf32> to vector<8x10xf32>
    %21 = arith.subf %17, %20 : vector<8x10xf32>
    %22 = math.exp %21 : vector<8x10xf32>
    %cst_13 = arith.constant dense<0.000000e+00> : vector<8xf32>
    %23 = vector.multi_reduction <add>, %22, %cst_13 [1] : vector<8x10xf32> to vector<8xf32>
    %24 = vector.shape_cast %23 : vector<8xf32> to vector<8x1xf32>
    %25 = math.log %24 : vector<8x1xf32>
    %26 = vector.broadcast %25 : vector<8x1xf32> to vector<8x10xf32>
    %27 = arith.subf %21, %26 : vector<8x10xf32>
    %28 = arith.index_cast %c0_i32_8 : i32 to index
    %c0_14 = arith.constant 0 : index
    %c0_15 = arith.constant 0 : index
    %29 = vector.load %arg6[%28, %c0_14, %c0_15] : memref<4x8x10xf32, #tpu.memory_space<vmem>>, vector<1x8x10xf32>
    %30 = vector.shape_cast %29 : vector<1x8x10xf32> to vector<8x10xf32>
    %31 = vector.shape_cast %27 : vector<8x10xf32> to vector<1x8x10xf32>
    tpu.vector_store %arg6[%28, %c0_14, %c0_15], %31 {strides = array<i32>} : memref<4x8x10xf32, #tpu.memory_space<vmem>>, vector<1x8x10xf32>,
    %c1_i32 = arith.constant 1 : i32
    %32 = arith.index_cast %c1_i32 : i32 to index
    %c0_16 = arith.constant 0 : index
    %c0_17 = arith.constant 0 : index
    %33 = vector.load %arg1[%32, %c0_16, %c0_17] : memref<4x8x16xf32, #tpu.memory_space<vmem>>, vector<1x8x16xf32>
    %34 = vector.shape_cast %33 : vector<1x8x16xf32> to vector<8x16xf32>
    %cst_18 = arith.constant dense<0.000000e+00> : vector<8x42xf32>
    %35 = tpu.matmul %34, %3, %cst_18 {dimension_numbers = #tpu.dot_dimension_numbers<[1], [0], [0], [1], [0, 0, 1, 1], [], []>, precision = #tpu.contract_precision<fp32>} : vector<8x16xf32>, vector<16x42xf32>, vector<8x42xf32> -> vector<8x42xf32>
    %cst_19 = arith.constant dense<0.000000e+00> : vector<8x42xf32>
    %36 = tpu.matmul %16, %4, %cst_19 {dimension_numbers = #tpu.dot_dimension_numbers<[1], [0], [0], [1], [0, 0, 1, 1], [], []>, precision = #tpu.contract_precision<fp32>} : vector<8x32xf32>, vector<32x42xf32>, vector<8x42xf32> -> vector<8x42xf32>
    %37 = arith.addf %35, %36 : vector<8x42xf32>
    %38 = arith.addf %37, %7 : vector<8x42xf32>
    %39 = vector.extract_strided_slice %38 {offsets = [0, 0], sizes = [8, 32], strides = [1, 1]} : vector<8x42xf32> to vector<8x32xf32>
    %40 = vector.extract_strided_slice %38 {offsets = [0, 32], sizes = [8, 10], strides = [1, 1]} : vector<8x42xf32> to vector<8x10xf32>
    %cst_20 = arith.constant dense<0xFF800000> : vector<8xf32>
    %41 = vector.multi_reduction <maximumf>, %40, %cst_20 [1] : vector<8x10xf32> to vector<8xf32>
    %42 = vector.shape_cast %41 : vector<8xf32> to vector<8x1xf32>
    %43 = vector.broadcast %42 : vector<8x1xf32> to vector<8x10xf32>
    %44 = arith.subf %40, %43 : vector<8x10xf32>
    %45 = math.exp %44 : vector<8x10xf32>
    %cst_21 = arith.constant dense<0.000000e+00> : vector<8xf32>
    %46 = vector.multi_reduction <add>, %45, %cst_21 [1] : vector<8x10xf32> to vector<8xf32>
    %47 = vector.shape_cast %46 : vector<8xf32> to vector<8x1xf32>
    %48 = math.log %47 : vector<8x1xf32>
    %49 = vector.broadcast %48 : vector<8x1xf32> to vector<8x10xf32>
    %50 = arith.subf %44, %49 : vector<8x10xf32>
    %51 = arith.index_cast %c1_i32 : i32 to index
    %c0_22 = arith.constant 0 : index
    %c0_23 = arith.constant 0 : index
    %52 = vector.load %arg6[%51, %c0_22, %c0_23] : memref<4x8x10xf32, #tpu.memory_space<vmem>>, vector<1x8x10xf32>
    %53 = vector.shape_cast %52 : vector<1x8x10xf32> to vector<8x10xf32>
    %54 = vector.shape_cast %50 : vector<8x10xf32> to vector<1x8x10xf32>
    tpu.vector_store %arg6[%51, %c0_22, %c0_23], %54 {strides = array<i32>} : memref<4x8x10xf32, #tpu.memory_space<vmem>>, vector<1x8x10xf32>,
    %c2_i32 = arith.constant 2 : i32
    %55 = arith.index_cast %c2_i32 : i32 to index
    %c0_24 = arith.constant 0 : index
    %c0_25 = arith.constant 0 : index
    %56 = vector.load %arg1[%55, %c0_24, %c0_25] : memref<4x8x16xf32, #tpu.memory_space<vmem>>, vector<1x8x16xf32>
    %57 = vector.shape_cast %56 : vector<1x8x16xf32> to vector<8x16xf32>
    %cst_26 = arith.constant dense<0.000000e+00> : vector<8x42xf32>
    %58 = tpu.matmul %57, %3, %cst_26 {dimension_numbers = #tpu.dot_dimension_numbers<[1], [0], [0], [1], [0, 0, 1, 1], [], []>, precision = #tpu.contract_precision<fp32>} : vector<8x16xf32>, vector<16x42xf32>, vector<8x42xf32> -> vector<8x42xf32>
    %cst_27 = arith.constant dense<0.000000e+00> : vector<8x42xf32>
    %59 = tpu.matmul %39, %4, %cst_27 {dimension_numbers = #tpu.dot_dimension_numbers<[1], [0], [0], [1], [0, 0, 1, 1], [], []>, precision = #tpu.contract_precision<fp32>} : vector<8x32xf32>, vector<32x42xf32>, vector<8x42xf32> -> vector<8x42xf32>
    %60 = arith.addf %58, %59 : vector<8x42xf32>
    %61 = arith.addf %60, %7 : vector<8x42xf32>
    %62 = vector.extract_strided_slice %61 {offsets = [0, 0], sizes = [8, 32], strides = [1, 1]} : vector<8x42xf32> to vector<8x32xf32>
    %63 = vector.extract_strided_slice %61 {offsets = [0, 32], sizes = [8, 10], strides = [1, 1]} : vector<8x42xf32> to vector<8x10xf32>
    %cst_28 = arith.constant dense<0xFF800000> : vector<8xf32>
    %64 = vector.multi_reduction <maximumf>, %63, %cst_28 [1] : vector<8x10xf32> to vector<8xf32>
    %65 = vector.shape_cast %64 : vector<8xf32> to vector<8x1xf32>
    %66 = vector.broadcast %65 : vector<8x1xf32> to vector<8x10xf32>
    %67 = arith.subf %63, %66 : vector<8x10xf32>
    %68 = math.exp %67 : vector<8x10xf32>
    %cst_29 = arith.constant dense<0.000000e+00> : vector<8xf32>
    %69 = vector.multi_reduction <add>, %68, %cst_29 [1] : vector<8x10xf32> to vector<8xf32>
    %70 = vector.shape_cast %69 : vector<8xf32> to vector<8x1xf32>
    %71 = math.log %70 : vector<8x1xf32>
    %72 = vector.broadcast %71 : vector<8x1xf32> to vector<8x10xf32>
    %73 = arith.subf %67, %72 : vector<8x10xf32>
    %74 = arith.index_cast %c2_i32 : i32 to index
    %c0_30 = arith.constant 0 : index
    %c0_31 = arith.constant 0 : index
    %75 = vector.load %arg6[%74, %c0_30, %c0_31] : memref<4x8x10xf32, #tpu.memory_space<vmem>>, vector<1x8x10xf32>
    %76 = vector.shape_cast %75 : vector<1x8x10xf32> to vector<8x10xf32>
    %77 = vector.shape_cast %73 : vector<8x10xf32> to vector<1x8x10xf32>
    tpu.vector_store %arg6[%74, %c0_30, %c0_31], %77 {strides = array<i32>} : memref<4x8x10xf32, #tpu.memory_space<vmem>>, vector<1x8x10xf32>,
    %c3_i32 = arith.constant 3 : i32
    %78 = arith.index_cast %c3_i32 : i32 to index
    %c0_32 = arith.constant 0 : index
    %c0_33 = arith.constant 0 : index
    %79 = vector.load %arg1[%78, %c0_32, %c0_33] : memref<4x8x16xf32, #tpu.memory_space<vmem>>, vector<1x8x16xf32>
    %80 = vector.shape_cast %79 : vector<1x8x16xf32> to vector<8x16xf32>
    %cst_34 = arith.constant dense<0.000000e+00> : vector<8x42xf32>
    %81 = tpu.matmul %80, %3, %cst_34 {dimension_numbers = #tpu.dot_dimension_numbers<[1], [0], [0], [1], [0, 0, 1, 1], [], []>, precision = #tpu.contract_precision<fp32>} : vector<8x16xf32>, vector<16x42xf32>, vector<8x42xf32> -> vector<8x42xf32>
    %cst_35 = arith.constant dense<0.000000e+00> : vector<8x42xf32>
    %82 = tpu.matmul %62, %4, %cst_35 {dimension_numbers = #tpu.dot_dimension_numbers<[1], [0], [0], [1], [0, 0, 1, 1], [], []>, precision = #tpu.contract_precision<fp32>} : vector<8x32xf32>, vector<32x42xf32>, vector<8x42xf32> -> vector<8x42xf32>
    %83 = arith.addf %81, %82 : vector<8x42xf32>
    %84 = arith.addf %83, %7 : vector<8x42xf32>
    %85 = vector.extract_strided_slice %84 {offsets = [0, 0], sizes = [8, 32], strides = [1, 1]} : vector<8x42xf32> to vector<8x32xf32>
    %86 = vector.extract_strided_slice %84 {offsets = [0, 32], sizes = [8, 10], strides = [1, 1]} : vector<8x42xf32> to vector<8x10xf32>
    %cst_36 = arith.constant dense<0xFF800000> : vector<8xf32>
    %87 = vector.multi_reduction <maximumf>, %86, %cst_36 [1] : vector<8x10xf32> to vector<8xf32>
    %88 = vector.shape_cast %87 : vector<8xf32> to vector<8x1xf32>
    %89 = vector.broadcast %88 : vector<8x1xf32> to vector<8x10xf32>
    %90 = arith.subf %86, %89 : vector<8x10xf32>
    %91 = math.exp %90 : vector<8x10xf32>
    %cst_37 = arith.constant dense<0.000000e+00> : vector<8xf32>
    %92 = vector.multi_reduction <add>, %91, %cst_37 [1] : vector<8x10xf32> to vector<8xf32>
    %93 = vector.shape_cast %92 : vector<8xf32> to vector<8x1xf32>
    %94 = math.log %93 : vector<8x1xf32>
    %95 = vector.broadcast %94 : vector<8x1xf32> to vector<8x10xf32>
    %96 = arith.subf %90, %95 : vector<8x10xf32>
    %97 = arith.index_cast %c3_i32 : i32 to index
    %c0_38 = arith.constant 0 : index
    %c0_39 = arith.constant 0 : index
    %98 = vector.load %arg6[%97, %c0_38, %c0_39] : memref<4x8x10xf32, #tpu.memory_space<vmem>>, vector<1x8x10xf32>
    %99 = vector.shape_cast %98 : vector<1x8x10xf32> to vector<8x10xf32>
    %100 = vector.shape_cast %96 : vector<8x10xf32> to vector<1x8x10xf32>
    tpu.vector_store %arg6[%97, %c0_38, %c0_39], %100 {strides = array<i32>} : memref<4x8x10xf32, #tpu.memory_space<vmem>>, vector<1x8x10xf32>,
    %c4_i32 = arith.constant 4 : i32
    %c0_40 = arith.constant 0 : index
    %c0_41 = arith.constant 0 : index
    %101 = vector.load %arg8[%c0_40, %c0_41] : memref<8x32xf32, #tpu.memory_space<vmem>>, vector<8x32xf32>
    tpu.vector_store %arg8[%c0_40, %c0_41], %85 {strides = array<i32>} : memref<8x32xf32, #tpu.memory_space<vmem>>, vector<8x32xf32>,
    %c1_i32_42 = arith.constant 1 : i32
    %102 = arith.cmpi eq, %arg0, %c1_i32_42 : i32
    %103 = arith.extui %102 : i1 to i32
    %c0_i32_43 = arith.constant 0 : i32
    %104 = arith.cmpi ne, %103, %c0_i32_43 : i32
    scf.if %104 {
      %c0_44 = arith.constant 0 : index
      %c0_45 = arith.constant 0 : index
      %105 = vector.load %arg7[%c0_44, %c0_45] : memref<8x32xf32, #tpu.memory_space<vmem>>, vector<8x32xf32>
      tpu.vector_store %arg7[%c0_44, %c0_45], %85 {strides = array<i32>} : memref<8x32xf32, #tpu.memory_space<vmem>>, vector<8x32xf32>,
    } else {
    }
    return
  }
  func.func @transform_0(%arg0: i32) -> (i32, i32, i32) {
    %c0_i32 = arith.constant 0 : i32
    %c0_i32_0 = arith.constant 0 : i32
    %c0_i32_1 = arith.constant 0 : i32
    return %arg0, %c0_i32, %c0_i32_0 : i32, i32, i32
  }
  func.func @transform_1(%arg0: i32) -> (i32, i32) {
    %c0_i32 = arith.constant 0 : i32
    %c0_i32_0 = arith.constant 0 : i32
    %c0_i32_1 = arith.constant 0 : i32
    return %c0_i32, %c0_i32_0 : i32, i32
  }
  func.func @transform_2(%arg0: i32) -> (i32, i32) {
    %c0_i32 = arith.constant 0 : i32
    %c0_i32_0 = arith.constant 0 : i32
    %c0_i32_1 = arith.constant 0 : i32
    return %c0_i32, %c0_i32_0 : i32, i32
  }
  func.func @transform_3(%arg0: i32) -> (i32, i32) {
    %c0_i32 = arith.constant 0 : i32
    %c0_i32_0 = arith.constant 0 : i32
    %c0_i32_1 = arith.constant 0 : i32
    return %c0_i32, %c0_i32_0 : i32, i32
  }
  func.func @transform_4(%arg0: i32) -> (i32, i32) {
    %c0_i32 = arith.constant 0 : i32
    %c0_i32_0 = arith.constant 0 : i32
    %c0_i32_1 = arith.constant 0 : i32
    return %c0_i32, %c0_i32_0 : i32, i32
  }
  func.func @transform_5(%arg0: i32) -> (i32, i32, i32) {
    %c0_i32 = arith.constant 0 : i32
    %c0_i32_0 = arith.constant 0 : i32
    %c0_i32_1 = arith.constant 0 : i32
    return %arg0, %c0_i32, %c0_i32_0 : i32, i32, i32
  }
  func.func @transform_6(%arg0: i32) -> (i32, i32) {
    %c0_i32 = arith.constant 0 : i32
    %c0_i32_0 = arith.constant 0 : i32
    %c0_i32_1 = arith.constant 0 : i32
    return %c0_i32, %c0_i32_0 : i32, i32
  }
}

</mosaic_0001>

<bundles_post_ra>
// kernel: tpu_custom_call.1
= control target key start
LH: loop header
LB: loop body
LE: loop exit
PB: predicated region body
PF: predicated region fallthrough
CT: control target
= control target key end

     0   :  { %12 = vsyncpa [#allocation4], 0  ;;  %s6278_s0 = inlined_call_operand.hbm [shape: f32[8,8,16], index: 0, kind: input, shape index: {}]   ;;  %s6279_s1 = inlined_call_operand.hbm [shape: f32[8,32], index: 1, kind: input, shape index: {}]   ;;  %s6280_s2 = inlined_call_operand.hbm [shape: f32[16,42], index: 2, kind: input, shape index: {}]   ;;  %s6281_s3 = inlined_call_operand.hbm [shape: f32[32,42], index: 3, kind: input, shape index: {}]   ;;  %s6282_s4 = inlined_call_operand.vmem [shape: f32[1,42], index: 4, kind: input, shape index: {}]   ;;  %s6283_s5 = inlined_call_operand.hbm [shape: f32[8,8,10], index: 5, kind: output, shape index: {0}]   ;;  %s6284_s6 = inlined_call_operand.hbm [shape: f32[8,32], index: 6, kind: output, shape index: {1}]  }
   0x1   :  { %14 = vsyncpa [#allocation4 + $0x1], 0 }
   0x2   :  { %15 = vsyncpa [#allocation7], 0 }
   0x3   :  { %16 = vsyncpa [#allocation10], 0 }
   0x4   :  { %17 = vsyncpa [#allocation5], 0 }
   0x5   :  { %19 = vsyncpa [#allocation5 + $0x1], 0 }
   0x6   :  { %20 = vsyncpa [#allocation13], 0  ;;  %s5630_s21 = smov 0   ;;  %s5632_s22 = smov 0  }
   0x7   :  { %s5634_s23 = smov 0   ;;  %s5636_s24 = smov 0  }
   0x8 LB: > { %s5651_s25 = sadd.s32 4294967295, %s5579_s24   ;;  %s4380_s26 = sadd.s32 4294967294, %s5579_s24   ;;  %s5579_s24 = sphi %s5636_s24, %s6312_s24   ;;  %s5575_s23 = sphi %s5634_s23, %s6311_s23   ;;  %s5571_s22 = sphi %s5632_s22, %s6310_s22   ;;  %s5567_s21 = sphi %s5630_s21, %s6309_s21  }
   0x9   : > { %p46_p0 = scmp.ne.s32.totalorder %s5571_s22, %s5567_s21  ;;  %p6285_p1 = scmp.eq.s32.totalorder %s5651_s25, 0 }
   0xa   : > { %p160_p3 = scmp.eq.s32.totalorder %s4380_s26, 1  ;;  %p4381_p5 = scmp.ge.s32.totalorder %s5579_s24, 1 }
   0xb   : > { %p5660_p4 = por %p6285_p1, %p46_p0  ;;  %p188_p7 = scmp.lt.s32.totalorder %s5579_s24, 3 }
   0xc   : > { %p5665_p6 = por %p160_p3, %p46_p0  ;;  %s5581_s30 = smov [#allocation6]  }
   0xd   : > { %s6288_s27 = scalar_select %p5660_p4, 1, 0 }
   0xe   : > { %s6289_s28 = scalar_select %p5665_p6, 1, 0 }
   0xf   : > { %p5671_p9 = pnand %p4381_p5, %p188_p7  ;;  %s201_s7 = sshll.u32 %s5581_s30, 4  ;;  %s202_s7 = int_to_ptr.vmem [resolvable:$true] %s201_s7 }
  0x10   : > { %s5582_s8 = smov [#allocation8]   ;;  %s5583_s11 = smov [#allocation9]  }
  0x11   : > { %s6290_s29 = scalar_select %p5671_p9, 1, 0 }
  0x12   : > { %p5273_p11 = pneg %p5671_p9  ;;  %s211_s9 = sshll.u32 %s5582_s8, 4  ;;  %s5684_s9 = int_to_ptr.vmem [resolvable:$true] %s211_s9 }
  0x13   : > { %s5686_s12 = sshll.u32 %s5583_s11, 4  ;;  %s5361_s15 = scalar_lea.hbm %s6279_s1, 128  ;;  %s225_s12 = int_to_ptr.vmem [resolvable:$true] %s5686_s12 }
  0x14   : > { %p5680_p12 = pnand %p5273_p11, %p6285_p1  ;;  %p5362_p13 = scmp.ne.s32.totalorder %s6279_s1, %s5361_s15 }
  0x15   : > { %p5368_p7 = scmp.lt.u32.totalorder %s5361_s15, %s6279_s1 }
  0x16   : > { %p5696_p0 = pneg %p5680_p12 }
  0x18   : > { %p5364_p3 = pnand %p5696_p0, %p5362_p13 }
  0x1a   : > { %p5365_p5 = pneg %p5364_p3 }
  0x1c   : > { %p5370_p11 = pnand %p5368_p7, %p5365_p5 }
  0x1e   : > { %5373 = shalt.err (!%p5370_p11)
}
  0x1f   : > { %s5374_s26 = scalar_lea.vmem %s202_s7, 128  ;;  %p5382_p2 = scmp.lt.s32.totalorder %s202_s7, %s202_s7 }
  0x20   : > { %p5375_p10 = scmp.ne.s32.totalorder %s202_s7, %s5374_s26  ;;  %p5383_p6 = scmp.lt.s32.totalorder %s5374_s26, %s5374_s26 }
  0x22   : > { %p5377_p8 = pnand %p5375_p10, %p5696_p0  ;;  %p5384_p4 = por %p5383_p6, %p5382_p2 }
  0x24   : > { %p5378_p1 = pneg %p5377_p8 }
  0x26   : > { %p5385_p9 = pnand %p5384_p4, %p5378_p1 }
  0x28   : > { %5388 = shalt.err (!%p5385_p9)
}
  0x29   : > { %5276 = dma.hbm_to_vmem [thread:$0]  (!%p5680_p12), %s6279_s1, 128, %s202_s7, [#allocation7]  }
  0x2a   : > { %s5389_s14 = scalar_lea.hbm %s6280_s2, 256 }
  0x2b   : > { %p5390_p8 = scmp.ne.s32.totalorder %s6280_s2, %s5389_s14  ;;  %p5396_p1 = scmp.lt.u32.totalorder %s5389_s14, %s6280_s2 }
  0x2d   : > { %p5392_p10 = pnand %p5390_p8, %p5696_p0 }
  0x2f   : > { %p5393_p2 = pneg %p5392_p10 }
  0x31   : > { %p5398_p4 = pnand %p5396_p1, %p5393_p2 }
  0x33   : > { %5401 = shalt.err (!%p5398_p4)
}
  0x34   : > { %s5402_s7 = scalar_lea.vmem %s5684_s9, 256  ;;  %p5410_p3 = scmp.lt.s32.totalorder %s5684_s9, %s5684_s9 }
  0x35   : > { %p5403_p6 = scmp.ne.s32.totalorder %s5684_s9, %s5402_s7  ;;  %p5411_p5 = scmp.lt.s32.totalorder %s5402_s7, %s5402_s7 }
  0x37   : > { %p5405_p9 = pnand %p5403_p6, %p5696_p0  ;;  %p5412_p7 = por %p5411_p5, %p5410_p3 }
  0x39   : > { %p5406_p13 = pneg %p5405_p9 }
  0x3b   : > { %p5413_p11 = pnand %p5412_p7, %p5406_p13 }
  0x3d   : > { %5416 = shalt.err (!%p5413_p11)
}
  0x3e   : > { %s5584_s20 = smov 128   ;;  %s5585_s26 = smov 8  }
  0x3f   : > { %5279 = dma.hbm_to_vmem [thread:$0]  (!%p5680_p12), %s6280_s2, 256, %s5684_s9, [#allocation7], %s5584_s20, %s5584_s20, %s5585_s26  }
  0x40   : > { %s5417_s14 = scalar_lea.hbm %s6281_s3, 512 }
  0x41   : > { %p5418_p8 = scmp.ne.s32.totalorder %s6281_s3, %s5417_s14  ;;  %p5424_p1 = scmp.lt.u32.totalorder %s5417_s14, %s6281_s3 }
  0x43   : > { %p5420_p10 = pnand %p5418_p8, %p5696_p0 }
  0x45   : > { %p5421_p2 = pneg %p5420_p10 }
  0x47   : > { %p5426_p4 = pnand %p5424_p1, %p5421_p2 }
  0x49   : > { %5429 = shalt.err (!%p5426_p4)
}
  0x4a   : > { %s5430_s7 = scalar_lea.vmem %s225_s12, 512  ;;  %p5438_p3 = scmp.lt.s32.totalorder %s225_s12, %s225_s12 }
  0x4b   : > { %p5431_p6 = scmp.ne.s32.totalorder %s225_s12, %s5430_s7  ;;  %p5439_p5 = scmp.lt.s32.totalorder %s5430_s7, %s5430_s7 }
  0x4d   : > { %p5433_p9 = pnand %p5431_p6, %p5696_p0  ;;  %p5440_p7 = por %p5439_p5, %p5438_p3 }
  0x4f   : > { %p5434_p13 = pneg %p5433_p9 }
  0x51   : > { %p5441_p11 = pnand %p5440_p7, %p5434_p13 }
  0x53   : > { %5444 = shalt.err (!%p5441_p11)
}
  0x54   : > { %5282 = dma.hbm_to_vmem [thread:$0]  (!%p5680_p12), %s6281_s3, 512, %s225_s12, [#allocation10], %s5584_s20, %s5584_s20, %s5585_s26  }
  0x55   : > { %s5761_s18 = sadd.s32 1, %s5579_s24   ;;  %s33_s8 = sadd.s32 1, %s5575_s23 }
  0x56   : > { %s30_s10 = ssub.s32 %s5579_s24, %s5761_s18  ;;  %p40_p8 = scmp.ne.s32.totalorder %s5575_s23, %s5571_s22 }
  0x57   : > { %p31_p0 = scmp.eq.s32.totalorder %s30_s10, 0  ;;  %p41_p10 = scmp.eq.s32.totalorder %s5579_s24, 0 }
  0x58   : > { %p5294_p2 = scmp.lt.s32.totalorder %s5579_s24, 2  ;;  %p6293_p4 = scmp.eq.s32.totalorder %s5651_s25, 1 }
  0x59   : > { %s5771_s11 = scalar_select %p31_p0, %s5575_s23, %s33_s8  }
  0x5a   : > { %p42_p1 = por %p41_p10, %p40_p8  ;;  %p5775_p6 = por %p6293_p4, %p40_p8 }
  0x5b   : > { %s241_s14 = sand.u32 1, %s5575_s23   ;;  %s4411_s15 = sshll.u32 %s5579_s24, 9 }
  0x5c   : > { %s4386_s12 = sshll.u32 %s241_s14, 5  ;;  %s5784_s19 = scalar_lea.hbm %s6278_s0, %s4411_s15 }
  0x5d   : > { %s245_s7 = scalar_lea.vmem [#allocation3], %s4386_s12  ;;  %p5786_p12 = pnand %p5294_p2, %p42_p1 }
  0x5e   : > { %s252_s9 = sshll.u32 %s245_s7, 4  ;;  %s5792_s10 = scalar_lea.sflag [#allocation4], %s241_s14  ;;  %s5790_s9 = int_to_ptr.vmem [resolvable:$true] %s252_s9 }
  0x5f   : > { %s5445_s8 = scalar_lea.hbm %s5784_s19, 512  ;;  %p5447_p13 = pneg %p5786_p12 }
  0x60   : > { %p5446_p9 = scmp.ne.s32.totalorder %s5784_s19, %s5445_s8  ;;  %s5450_s16 = scalar_lea.hbm %s6278_s0, 1024 }
  0x61   : > { %p5451_p7 = scmp.lt.u32.totalorder %s5784_s19, %s6278_s0  ;;  %p5452_p11 = scmp.lt.u32.totalorder %s5450_s16, %s5445_s8 }
  0x62   : > { %p5448_p3 = pnand %p5447_p13, %p5446_p9  ;;  %p5454_p8 = scmp.lt.u32.totalorder %s5445_s8, %s5784_s19 }
  0x63   : > { %p5453_p0 = por %p5452_p11, %p5451_p7 }
  0x64   : > { %p5449_p5 = pneg %p5448_p3 }
  0x65   : > { %p5455_p10 = por %p5454_p8, %p5453_p0 }
  0x67   : > { %p5456_p2 = pnand %p5455_p10, %p5449_p5 }
  0x69   : > { %5459 = shalt.err (!%p5456_p2)
}
  0x6a   : > { %s5460_s14 = scalar_lea.vmem %s5790_s9, 512  ;;  %s5586_s15 = smov [#allocation3]  }
  0x6b   : > { %p5461_p1 = scmp.ne.s32.totalorder %s5790_s9, %s5460_s14  ;;  %s5465_s12 = sshll.u32 %s5586_s15, 4  ;;  %s5466_s12 = int_to_ptr.vmem [resolvable:$false] %s5465_s12 }
  0x6c   : > { %s5467_s17 = scalar_lea.vmem %s5466_s12, 1024  ;;  %p5468_p3 = scmp.lt.s32.totalorder %s5790_s9, %s5466_s12 }
  0x6d   : > { %p5463_p4 = pnand %p5461_p1, %p5447_p13  ;;  %p5469_p7 = scmp.lt.s32.totalorder %s5467_s17, %s5460_s14 }
  0x6f   : > { %p5464_p9 = pneg %p5463_p4  ;;  %p5470_p11 = por %p5469_p7, %p5468_p3 }
  0x71   : > { %p5471_p0 = pnand %p5470_p11, %p5464_p9 }
  0x73   : > { %5474 = shalt.err (!%p5471_p0)
}
  0x74   : > { %5286 = dma.hbm_to_vmem [thread:$0]  (!%p5786_p12), %s5784_s19, 512, %s5790_s9, %s5792_s10, %s5584_s20, %s5584_s20, %s5585_s26  }
  0x75   : > { %p6296_p13 = scmp.ne.s32.totalorder %s6290_s29, 0 }
  0x76   : > { %s5826_s8 = sand.u32 (!%p6296_p13), 1, %s5571_s22   ;;  %p6297_p5 = scmp.ne.s32.totalorder (!%p6296_p13), %s6288_s27, 0 }
  0x77   : > { %264 = sbr.rel (%p6296_p13) target bundleno = 1778 (0x6f2), region = 40  ;;  %s4390_s16 = sshll.u32 (!%p6296_p13), %s5826_s8, 5 }
  0x78   : > { %s267_s7 = scalar_lea.sflag (!%p6296_p13), [#allocation4], %s5826_s8  ;;  %s5830_s14 = scalar_lea.vmem (!%p6296_p13), [#allocation3], %s4390_s16 }
  0x7e   : > { %5546 = dma.done.wait (%p6297_p5), %s267_s7, 512  }
  0x7f   : > { %5548 = vsyncadd (%p6297_p5), %s267_s7, 4294966784  ;;  %p6298_p12 = scmp.eq.s32.totalorder %s5651_s25, 0 }
  0x81   : > { %5550 = dma.done.wait (%p6298_p12), [#allocation7], 384   ;;  %p6299_p8 = pmov %p6298_p12 }
  0x83   : > { %5552 = vsyncadd (%p6299_p8), [#allocation7], 4294966912  ;;  %p6300_p10 = pmov %p6299_p8 }
  0x84   : > { %p6301_p2 = pmov %p6299_p8 }
  0x85   : > { %5554 = dma.done.wait (%p6300_p10), [#allocation10], 512  }
  0x86   : > { %5556 = vsyncadd (%p6301_p2), [#allocation10], 4294966784  ;;  %s5844_s29 = scalar_lea.vmem [#allocation11], %s4390_s16  ;;  %p6302_p1 = scmp.ne.s32.totalorder %s5651_s25, 0 }
  0x87   : > { %v317_v0 = vld [vmem:[#allocation6] sm:$0xff] (!%p6302_p1)  ;;  %vm318_vm0 = vcmask (!%p6302_p1), 261120  }
  0x88   : > { %316 = sbr.rel (%p6302_p1) target bundleno = 143 (0x8f), region = 60  ;;  %319 = vst.msk [vmem:[#allocation2] sm:$0xff] (!%p6302_p1), %vm318_vm0, %v317_v0 }
  0x8f PF: > { %v322_v1 = vld [vmem:[#allocation9] sm:$0xff]  ;;  %v323_v2 = vld [vmem:[#allocation9 + $0x8] sm:$0xff]  ;;  %v324_v3 = vld [vmem:[#allocation9 + $0x10] sm:$0xff]  ;;  %v5587_v4 = vmov 0.0|0.0   ;;  %vm335_vm1 = vcmask 261120   ;;  %vm5588_vm2 = vmmov 0  }
  0x90   : > { %5037 = vmatprep.subr.bf16.mxu0 %v5587_v4  ;;  %v340_v5 = vand.u32 4294901760, %v322_v1  ;;  %v343_v6 = vand.u32 4294901760, %v323_v2  ;;  %v325_v7 = vld [vmem:[#allocation9 + $0x18] sm:$0xff]  ;;  %v346_v8 = vand.u32 4294901760, %v324_v3  ;;  %5043 = vmatprep.subr.bf16.mxu1 %v5587_v4  ;;  %v333_v9 = vld [vmem:[#allocation2] sm:$0xff]  ;;  %v5589_v11 = vmov 0.0  }
  0x91   : > { %v349_v10 = vand.u32 4294901760, %v325_v7  ;;  %4613 = vmatprep.mubr.msk.f32.mxu0 %vm5588_vm2, %v5589_v11  ;;  %v337_v12 = vsel %vm335_vm1, %v333_v9, 0  ;;  %4624 = vmatprep.mubr.msk.f32.mxu1 %vm5588_vm2, %v5589_v11  ;;  %v334_v28 = vld [vmem:[%s5830_s14] sm:$0xff]  ;;  %vm824_vm3 = vcmask 130048   ;;  %v320_v37 = vld [vmem:[#allocation8] sm:$0xff]  ;;  %v321_v38 = vld [vmem:[#allocation8 + $0x8] sm:$0xff] }
  0x92   : > { %v5855_v13 = vpack.c.bf16 %v343_v6, %v340_v5  ;;  %v420_v14 = vsub.f32 %v322_v1, %v340_v5  ;;  %v427_v15 = vsub.f32 %v323_v2, %v343_v6  ;;  %v5857_v16 = vand.u32 4294901760, %v337_v12  ;;  %s5590_s26 = smov 96   ;;  %p4403_p4 = scmp.ne.s32.totalorder %s5651_s25, 1 }
  0x93   : > { %v434_v17 = vsub.f32 %v324_v3, %v346_v8  ;;  %v441_v18 = vsub.f32 %v325_v7, %v349_v10  ;;  %v5860_v19 = vpack.c.bf16 %v349_v10, %v346_v8  ;;  %v826_v39 = vsel %vm824_vm3, %v334_v28, 0 }
  0x94   : > { %5039 = vmatpush3.bf16.msra.mxu0 %v5855_v13  ;;  %v421_v20 = vand.u32 4294901760, %v420_v14  ;;  %v428_v21 = vand.u32 4294901760, %v427_v15  ;;  %v5863_v22 = vsub.f32 %v337_v12, %v5857_v16  ;;  %v5871_v34 = vpack.c.bf16 %v427_v15, %v420_v14 }
  0x95   : > { %5040 = vmatprep.subr.bf16.mxu0 %v5587_v4  ;;  %v435_v23 = vand.u32 4294901760, %v434_v17  ;;  %v442_v24 = vand.u32 4294901760, %v441_v18  ;;  %v829_v43 = vand.u32 4294901760, %v320_v37  ;;  %v832_v44 = vand.u32 4294901760, %v321_v38 }
  0x96   : > { %v422_v25 = vsub.f32 %v420_v14, %v421_v20  ;;  %v429_v26 = vsub.f32 %v427_v15, %v428_v21  ;;  %v410_v27 = vand.u32 4294901760, %v5863_v22  ;;  %v5879_v45 = vand.u32 4294901760, %v826_v39 }
  0x97   : > { %v436_v29 = vsub.f32 %v434_v17, %v435_v23  ;;  %v443_v30 = vsub.f32 %v441_v18, %v442_v24  ;;  %v5883_v46 = vpack.c.bf16 %v441_v18, %v434_v17  ;;  %v907_v48 = vsub.f32 %v320_v37, %v829_v43 }
  0x98   : > { %5042 = vmatpush3.bf16.msra.mxu0 %v5860_v19  ;;  %v423_v31 = vand.u32 4294901760, %v422_v25  ;;  %v430_v32 = vand.u32 4294901760, %v429_v26  ;;  %v411_v33 = vsub.f32 %v5863_v22, %v410_v27  ;;  %v896_v47 = vsub.f32 %v826_v39, %v5879_v45 }
  0x99   : > { %5049 = vmatprep.subr.bf16.mxu0 %v5587_v4  ;;  %v437_v35 = vand.u32 4294901760, %v436_v29  ;;  %v444_v36 = vand.u32 4294901760, %v443_v30  ;;  %v914_v49 = vsub.f32 %v321_v38, %v832_v44  ;;  %v5892_v50 = vpack.c.bf16 %v428_v21, %v421_v20  ;;  %v5969_v38 = vld [vmem:[%s6282_s4] ss:$0 sm:$0xff] }
  0x9a   : > { %v5874_v40 = vpack.c.bf16 %v430_v32, %v423_v31  ;;  %v412_v41 = vand.u32 4294901760, %v411_v33  ;;  %v897_v51 = vand.u32 4294901760, %v896_v47  ;;  %v908_v52 = vand.u32 4294901760, %v907_v48 }
  0x9b   : > { %v5877_v42 = vpack.c.bf16 %v444_v36, %v437_v35  ;;  %v915_v53 = vand.u32 4294901760, %v914_v49  ;;  %v5900_v54 = vpack.c.bf16 %v442_v24, %v435_v23  ;;  %v5910_v58 = vpack.c.bf16 %v832_v44, %v829_v43 }
  0x9c   : > { %5045 = vmatpush3.bf16.msra.mxu1 %v5874_v40  ;;  %4614 = vmatmul.mubr.f32.vlgmr.msra.gmra.mrb[0].mxu0 %v412_v41  ;;  %v898_v55 = vsub.f32 %v896_v47, %v897_v51  ;;  %v909_v56 = vsub.f32 %v907_v48, %v908_v52  ;;  %v5917_v62 = vpack.c.bf16 %v914_v49, %v907_v48  ;;  %vm1288_vm4 = vcmask 343296  }
  0x9d   : > { %5051 = vmatpush3.bf16.msra.mxu0 %v5871_v34  ;;  %5046 = vmatprep.subr.bf16.mxu1 %v5587_v4  ;;  %v916_v57 = vsub.f32 %v914_v49, %v915_v53  ;;  %v5932_v0 = vpack.c.bf16 %v915_v53, %v908_v52  ;;  %v4397_v52 = vld [vmem:[%s5830_s14 + $0x8] sm:$0xff]  ;;  %vm1299_vm5 = vcmask 80896  }
  0x9e   : > { %5052 = vmatprep.subr.bf16.mxu0 %v5587_v4  ;;  %4635 = vmatprep.mubr.msk.f32.mxu0 %vm5588_vm2, %v5589_v11  ;;  %v899_v59 = vand.u32 4294901760, %v898_v55  ;;  %v910_v60 = vand.u32 4294901760, %v909_v56  ;;  %v1802_v55 = vsel %vm824_vm3, %v4397_v52, 0 }
  0x9f   : > { %v917_v61 = vand.u32 4294901760, %v916_v57  ;;  %v1871_v57 = vand.u32 4294901760, %v1802_v55 }
  0xa0   : > { %5048 = vmatpush3.bf16.msra.mxu1 %v5877_v42 }
  0xa1   : > { %5054 = vmatpush3.bf16.msra.mxu0 %v5883_v46  ;;  %5055 = vmatprep.subr.bf16.mxu1 %v5587_v4  ;;  %v5925_v63 = vpack.c.bf16 %v917_v61, %v910_v60 }
  0xa2   : > { %5061 = vmatprep.subr.bf16.mxu0 %v5587_v4 }
  0xa3   : > { %4625 = vmatmul.mubr.f32.vlgmr.msra.gmra.mrb[0].mxu1 %v5857_v16 }
  0xa4   : > { %5057 = vmatpush3.bf16.msra.mxu1 %v5855_v13  ;;  %4636 = vmatmul.mubr.f32.vlgmr.msra.gmra.mrb[2].mxu0 %v5863_v22 }
  0xa5   : > { %5063 = vmatpush3.bf16.msra.mxu0 %v5892_v50  ;;  %5058 = vmatprep.subr.bf16.mxu1 %v5587_v4 }
  0xa6   : > { %5064 = vmatprep.subr.bf16.mxu0 %v5587_v4  ;;  %4646 = vmatprep.mubr.msk.f32.mxu1 %vm5588_vm2, %v5589_v11 }
  0xa7   : > { %4657 = vmatprep.mubr.msk.f32.mxu0 %vm5588_vm2, %v5589_v11 }
  0xa8   : > { %5060 = vmatpush3.bf16.msra.mxu1 %v5860_v19 }
  0xa9   : > { %5066 = vmatpush3.bf16.msra.mxu0 %v5900_v54  ;;  %5067 = vmatprep.subr.bf16.mxu1 %v5587_v4 }
  0xaa   : > { %5073 = vmatprep.subr.bf16.mxu0 %v5587_v4 }
  0xab   : > { %4647 = vmatmul.mubr.f32.vlgmr.msra.gmra.mrb[2].mxu1 %v410_v27 }
  0xac   : > { %5069 = vmatpush3.bf16.msra.mxu1 %v5855_v13  ;;  %4658 = vmatmul.mubr.f32.vlgmr.msra.gmra.mrb[4].mxu0 %v5857_v16 }
  0xad   : > { %5070 = vmatprep.subr.bf16.mxu1 %v5587_v4  ;;  %5075 = vmatpush3.bf16.msra.mxu0 %v5910_v58 }
  0xae   : > { %4668 = vmatprep.mubr.msk.f32.mxu1 %vm5588_vm2, %v5589_v11  ;;  %4675 = vmatprep.mubr.msk.f32.mxu0 %vm5588_vm2, %v5589_v11 }
  0xaf   : > { %5079 = vmatprep.subr.bf16.mxu0 %v5587_v4 }
  0xb0   : > { %5072 = vmatpush3.bf16.msra.mxu1 %v5860_v19  ;;  %4676 = vmatmul.mubr.f32.vlgmr.msra.gmra.mrb[6].mxu0 %v899_v59  ;;  %v1872_v59 = vsub.f32 %v1802_v55, %v1871_v57 }
  0xb1   : > { %5076 = vmatprep.subr.bf16.mxu1 %v5587_v4  ;;  %5081 = vmatpush3.bf16.msra.mxu0 %v5917_v62 }
  0xb2   : > { %4689 = vmatprep.mubr.msk.f32.mxu0 %vm5588_vm2, %v5589_v11  ;;  %5085 = vmatprep.subr.bf16.mxu0 %v5587_v4  ;;  %v1873_v60 = vand.u32 4294901760, %v1872_v59 }
  0xb3   : > { %4669 = vmatmul.mubr.f32.vlgmr.msra.gmra.mrb[4].mxu1 %v5857_v16 }
  0xb4   : > { %5078 = vmatpush3.bf16.msra.mxu1 %v5925_v63  ;;  %4682 = vmatprep.mubr.msk.f32.mxu1 %vm5588_vm2, %v5589_v11  ;;  %v1874_v61 = vsub.f32 %v1872_v59, %v1873_v60 }
  0xb5   : > { %5082 = vmatprep.subr.bf16.mxu1 %v5587_v4  ;;  %4690 = vmatmul.mubr.f32.vlgmr.msra.gmra.mrb[8].mxu0 %v896_v47 }
  0xb6   : > { %5087 = vmatpush3.bf16.msra.mxu0 %v5932_v0  ;;  %4703 = vmatprep.mubr.msk.f32.mxu0 %vm5588_vm2, %v5589_v11 }
  0xb7   : > { %4683 = vmatmul.mubr.f32.vlgmr.msra.gmra.mrb[6].mxu1 %v5879_v45  ;;  %5091 = vmatprep.subr.bf16.mxu0 %v5587_v4 }
  0xb8   : > { %5084 = vmatpush3.bf16.msra.mxu1 %v5910_v58  ;;  %4696 = vmatprep.mubr.msk.f32.mxu1 %vm5588_vm2, %v5589_v11 }
  0xb9   : > { %5088 = vmatprep.subr.bf16.mxu1 %v5587_v4  ;;  %4704 = vmatmul.mubr.f32.vlgmr.msra.gmra.mrb[10].mxu0 %v5879_v45 }
  0xba   : > { %5093 = vmatpush3.bf16.msra.mxu0 %v5855_v13  ;;  %4721 = vmatprep.mubr.msk.f32.mxu0 %vm5588_vm2, %v5589_v11 }
  0xbb   : > { %4697 = vmatmul.mubr.f32.vlgmr.msra.gmra.mrb[8].mxu1 %v897_v51  ;;  %5094 = vmatprep.subr.bf16.mxu0 %v5587_v4 }
  0xbc   : > { %5090 = vmatpush3.bf16.msra.mxu1 %v5910_v58  ;;  %4710 = vmatprep.mubr.msk.f32.mxu1 %vm5588_vm2, %v5589_v11 }
  0xbd   : > { %5097 = vmatprep.subr.bf16.mxu1 %v5587_v4 }
  0xbe   : > { %5096 = vmatpush3.bf16.msra.mxu0 %v5860_v19 }
  0xbf   : > { %4711 = vmatmul.mubr.f32.vlgmr.msra.gmra.mrb[10].mxu1 %v5879_v45  ;;  %5103 = vmatprep.subr.bf16.mxu0 %v5587_v4 }
  0xc0   : > { %5099 = vmatpush3.bf16.msra.mxu1 %v5874_v40  ;;  %4732 = vmatprep.mubr.msk.f32.mxu1 %vm5588_vm2, %v5589_v11 }
  0xc1   : > { %5100 = vmatprep.subr.bf16.mxu1 %v5587_v4 }
  0xc4   : > { %5102 = vmatpush3.bf16.msra.mxu1 %v5877_v42 }
  0xc5   : > { %5109 = vmatprep.subr.bf16.mxu1 %v5587_v4 }
 0x16f   : > { %v414_v1 = vpop.f32.mrb[0].mxu0 }
 0x170   : > { %v4615_v2 = vpop.f32.mrb[1].mxu0 }
 0x176   : > { %v505_v3 = vpop.f32.mrb[0].mxu1 }
 0x177   : > { %v506_v5 = vadd.f32 %v505_v3, %v414_v1  ;;  %v4626_v6 = vpop.f32.mrb[1].mxu1  ;;  %v585_v7 = vpop.f32.mrb[2].mxu0  ;;  %v1875_v1 = vand.u32 4294901760, %v1874_v61 }
 0x178   : > { %v4637_v8 = vpop.f32.mrb[3].mxu0 }
 0x179   : > { %v586_v9 = vadd.f32 %v585_v7, %v506_v5 }
 0x17e   : > { %v662_v10 = vpop.f32.mrb[2].mxu1 }
 0x17f   : > { %v663_v12 = vadd.f32 %v662_v10, %v586_v9  ;;  %v4648_v14 = vpop.f32.mrb[3].mxu1  ;;  %v745_v15 = vpop.f32.mrb[4].mxu0 }
 0x180   : > { %v4659_v16 = vpop.f32.mrb[5].mxu0 }
 0x181   : > { %v746_v17 = vadd.f32 %v745_v15, %v663_v12 }
 0x183   : > { %v901_v18 = vpop.f32.mrb[6].mxu0 }
 0x184   : > { %v4677_v20 = vpop.f32.mrb[7].mxu0 }
 0x186   : > { %v820_v21 = vpop.f32.mrb[4].mxu1 }
 0x187   : > { %v821_v22 = vadd.f32 %v820_v21, %v746_v17  ;;  %v4670_v23 = vpop.f32.mrb[5].mxu1 }
 0x188   : > { %v1058_v24 = vpop.f32.mrb[8].mxu0 }
 0x189   : > { %v902_v25 = vadd.f32 %v901_v18, %v821_v22  ;;  %v4691_v26 = vpop.f32.mrb[9].mxu0 }
 0x18a   : > { %v982_v27 = vpop.f32.mrb[6].mxu1 }
 0x18b   : > { %v983_v28 = vadd.f32 %v982_v27, %v902_v25  ;;  %v4684_v29 = vpop.f32.mrb[7].mxu1 }
 0x18c   : > { %v1210_v30 = vpop.f32.mrb[10].mxu0 }
 0x18d   : > { %v1059_v31 = vadd.f32 %v1058_v24, %v983_v28  ;;  %v4705_v32 = vpop.f32.mrb[11].mxu0 }
 0x18e   : > { %v1133_v33 = vpop.f32.mrb[8].mxu1 }
 0x18f   : > { %v1134_v35 = vadd.f32 %v1133_v33, %v1059_v31  ;;  %v4698_v36 = vpop.f32.mrb[9].mxu1 }
 0x191   : > { %v1211_v37 = vadd.f32 %v1210_v30, %v1134_v35 }
 0x192   : > { %v1283_v39 = vpop.f32.mrb[10].mxu1 }
 0x193   : > { %v1284_v41 = vadd.f32 %v1283_v39, %v1211_v37  ;;  %v4712_v43 = vpop.f32.mrb[11].mxu1 }
 0x195   : > { %v5972_v44 = vadd.f32 %v5969_v38, %v1284_v41 }
 0x197   : > { %v1314_v45 = vsel %vm335_vm1, %v5972_v44, 0  ;;  %v1289_v47 = vsel %vm1288_vm4, %v5972_v44, -inf }
 0x198   : > { %1290 = vmax.xlane.f32.xlu0 %v1289_v47  ;;  %v1385_v48 = vand.u32 4294901760, %v1314_v45 }
 0x19a   : > { %4733 = vmatmul.mubr.f32.vlgmr.msra.gmra.mrb[12].mxu1 %v1385_v48  ;;  %v1386_v49 = vsub.f32 %v1314_v45, %v1385_v48 }
 0x19b   : > { %5111 = vmatpush3.bf16.msra.mxu1 %v5855_v13  ;;  %4754 = vmatprep.mubr.msk.f32.mxu1 %vm5588_vm2, %v5589_v11 }
 0x19c   : > { %5112 = vmatprep.subr.bf16.mxu1 %v5587_v4  ;;  %v1387_v51 = vand.u32 4294901760, %v1386_v49 }
 0x19e   : > { %v1388_v53 = vsub.f32 %v1386_v49, %v1387_v51 }
 0x19f   : > { %5114 = vmatpush3.bf16.msra.mxu1 %v5860_v19 }
 0x1a0   : > { %5121 = vmatprep.subr.bf16.mxu1 %v5587_v4  ;;  %v1389_v56 = vand.u32 4294901760, %v1388_v53 }
 0x1a2   : > { %4755 = vmatmul.mubr.f32.vlgmr.msra.gmra.mrb[14].mxu1 %v1387_v51  ;;  %4722 = vmatmul.mubr.f32.vlgmr.msra.gmra.mrb[12].mxu0 %v1389_v56 }
 0x1a3   : > { %5105 = vmatpush3.bf16.msra.mxu0 %v5871_v34  ;;  %5123 = vmatpush3.bf16.msra.mxu1 %v5855_v13 }
 0x1a4   : > { %5106 = vmatprep.subr.bf16.mxu0 %v5587_v4  ;;  %5124 = vmatprep.subr.bf16.mxu1 %v5587_v4 }
 0x1a5   : > { %4743 = vmatprep.mubr.msk.f32.mxu0 %vm5588_vm2, %v5589_v11  ;;  %4776 = vmatprep.mubr.msk.f32.mxu1 %vm5588_vm2, %v5589_v11 }
 0x1a7   : > { %5108 = vmatpush3.bf16.msra.mxu0 %v5883_v46  ;;  %5126 = vmatpush3.bf16.msra.mxu1 %v5860_v19 }
 0x1a8   : > { %5115 = vmatprep.subr.bf16.mxu0 %v5587_v4  ;;  %5130 = vmatprep.subr.bf16.mxu1 %v5587_v4 }
 0x1aa   : > { %4744 = vmatmul.mubr.f32.vlgmr.msra.gmra.mrb[14].mxu0 %v1386_v49  ;;  %4777 = vmatmul.mubr.f32.vlgmr.msra.gmra.mrb[16].mxu1 %v1385_v48 }
 0x1ab   : > { %5117 = vmatpush3.bf16.msra.mxu0 %v5892_v50  ;;  %4765 = vmatprep.mubr.msk.f32.mxu0 %vm5588_vm2, %v5589_v11 }
 0x1ac   : > { %5118 = vmatprep.subr.bf16.mxu0 %v5587_v4  ;;  %5132 = vmatpush3.bf16.msra.mxu1 %v5925_v63 }
 0x1ad   : > { %4790 = vmatprep.mubr.msk.f32.mxu1 %vm5588_vm2, %v5589_v11  ;;  %5136 = vmatprep.subr.bf16.mxu1 %v5587_v4 }
 0x1af   : > { %5120 = vmatpush3.bf16.msra.mxu0 %v5900_v54  ;;  %4791 = vmatmul.mubr.f32.vlgmr.msra.gmra.mrb[18].mxu1 %v1871_v57 }
 0x1b0   : > { %5127 = vmatprep.subr.bf16.mxu0 %v5587_v4  ;;  %5138 = vmatpush3.bf16.msra.mxu1 %v5910_v58 }
 0x1b1   : > { %4804 = vmatprep.mubr.msk.f32.mxu1 %vm5588_vm2, %v5589_v11  ;;  %5142 = vmatprep.subr.bf16.mxu1 %v5587_v4 }
 0x1b2   : > { %4766 = vmatmul.mubr.f32.vlgmr.msra.gmra.mrb[16].mxu0 %v1385_v48 }
 0x1b3   : > { %5129 = vmatpush3.bf16.msra.mxu0 %v5910_v58  ;;  %4783 = vmatprep.mubr.msk.f32.mxu0 %vm5588_vm2, %v5589_v11 }
 0x1b4   : > { %5133 = vmatprep.subr.bf16.mxu0 %v5587_v4  ;;  %4805 = vmatmul.mubr.f32.vlgmr.msra.gmra.mrb[20].mxu1 %v1873_v60 }
 0x1b5   : > { %5144 = vmatpush3.bf16.msra.mxu1 %v5910_v58  ;;  %4818 = vmatprep.mubr.msk.f32.mxu1 %vm5588_vm2, %v5589_v11 }
 0x1b6   : > { %4784 = vmatmul.mubr.f32.vlgmr.msra.gmra.mrb[18].mxu0 %v1875_v1  ;;  %5151 = vmatprep.subr.bf16.mxu1 %v5587_v4 }
 0x1b7   : > { %5135 = vmatpush3.bf16.msra.mxu0 %v5917_v62  ;;  %4797 = vmatprep.mubr.msk.f32.mxu0 %vm5588_vm2, %v5589_v11 }
 0x1b8   : > { %5139 = vmatprep.subr.bf16.mxu0 %v5587_v4  ;;  %4819 = vmatmul.mubr.f32.vlgmr.msra.gmra.mrb[22].mxu1 %v1871_v57 }
 0x1b9   : > { %5153 = vmatpush3.bf16.msra.mxu1 %v5874_v40  ;;  %4840 = vmatprep.mubr.msk.f32.mxu1 %vm5588_vm2, %v5589_v11 }
 0x1ba   : > { %4798 = vmatmul.mubr.f32.vlgmr.msra.gmra.mrb[20].mxu0 %v1872_v59  ;;  %5154 = vmatprep.subr.bf16.mxu1 %v5587_v4 }
 0x1bb   : > { %5141 = vmatpush3.bf16.msra.mxu0 %v5932_v0  ;;  %4811 = vmatprep.mubr.msk.f32.mxu0 %vm5588_vm2, %v5589_v11 }
 0x1bc   : > { %5145 = vmatprep.subr.bf16.mxu0 %v5587_v4 }
 0x1bd   : > { %5156 = vmatpush3.bf16.msra.mxu1 %v5877_v42 }
 0x1be   : > { %4812 = vmatmul.mubr.f32.vlgmr.msra.gmra.mrb[22].mxu0 %v1871_v57  ;;  %5163 = vmatprep.subr.bf16.mxu1 %v5587_v4  ;;  %v4399_v57 = vld [vmem:[%s5830_s14 + $0x10] sm:$0xff] }
 0x1bf   : > { %5147 = vmatpush3.bf16.msra.mxu0 %v5855_v13  ;;  %4829 = vmatprep.mubr.msk.f32.mxu0 %vm5588_vm2, %v5589_v11  ;;  %v2777_v61 = vsel %vm824_vm3, %v4399_v57, 0 }
 0x1c0   : > { %5148 = vmatprep.subr.bf16.mxu0 %v5587_v4  ;;  %v2846_v1 = vand.u32 4294901760, %v2777_v61 }
 0x1c3   : > { %5150 = vmatpush3.bf16.msra.mxu0 %v5860_v19 }
 0x1c4   : > { %5157 = vmatprep.subr.bf16.mxu0 %v5587_v4 }
 0x225   : > { %v1291_v51 = vpop.xlane.xlu0 %1290 }
 0x226   : > { %v6048_v55 = vsub.f32 %v5972_v44, %v1291_v51 }
 0x228   : > { %v1293_v60 = vmul.f32 1.442695, %v6048_v55 }
 0x22a   : > { %5345 = vpow2.f32 %v1293_v60 }
 0x26d   : > { %v1482_v2 = vpop.f32.mrb[12].mxu1 }
 0x26e   : > { %v4734_v3 = vpop.f32.mrb[13].mxu1 }
 0x275   : > { %v1639_v5 = vpop.f32.mrb[14].mxu1  ;;  %v1391_v6 = vpop.f32.mrb[12].mxu0 }
 0x276   : > { %v1483_v7 = vadd.f32 %v1482_v2, %v1391_v6  ;;  %v4756_v8 = vpop.f32.mrb[15].mxu1  ;;  %v4723_v9 = vpop.f32.mrb[13].mxu0  ;;  %v2847_v2 = vsub.f32 %v2777_v61, %v2846_v1 }
 0x278   : > { %v2848_v3 = vand.u32 4294901760, %v2847_v2 }
 0x27a   : > { %v2849_v6 = vsub.f32 %v2847_v2, %v2848_v3 }
 0x27d   : > { %v1562_v10 = vpop.f32.mrb[14].mxu0  ;;  %v1797_v12 = vpop.f32.mrb[16].mxu1 }
 0x27e   : > { %v1563_v14 = vadd.f32 %v1562_v10, %v1483_v7  ;;  %v4745_v15 = vpop.f32.mrb[15].mxu0  ;;  %v4778_v16 = vpop.f32.mrb[17].mxu1  ;;  %v2850_v7 = vand.u32 4294901760, %v2849_v6 }
 0x280   : > { %v1640_v17 = vadd.f32 %v1639_v5, %v1563_v14  ;;  %v5346_v5 = vpop.eup %5345 }
 0x282   : > { %v1958_v18 = vpop.f32.mrb[18].mxu1 }
 0x283   : > { %v4792_v20 = vpop.f32.mrb[19].mxu1 }
 0x285   : > { %v1722_v21 = vpop.f32.mrb[16].mxu0 }
 0x286   : > { %v1723_v22 = vadd.f32 %v1722_v21, %v1640_v17  ;;  %v4767_v23 = vpop.f32.mrb[17].mxu0 }
 0x287   : > { %v2109_v24 = vpop.f32.mrb[20].mxu1 }
 0x288   : > { %v1798_v25 = vadd.f32 %v1797_v12, %v1723_v22  ;;  %v4806_v26 = vpop.f32.mrb[21].mxu1 }
 0x289   : > { %v1877_v27 = vpop.f32.mrb[18].mxu0 }
 0x28a   : > { %v1878_v28 = vadd.f32 %v1877_v27, %v1798_v25  ;;  %v4785_v29 = vpop.f32.mrb[19].mxu0 }
 0x28b   : > { %v2259_v30 = vpop.f32.mrb[22].mxu1 }
 0x28c   : > { %v1959_v31 = vadd.f32 %v1958_v18, %v1878_v28  ;;  %v4820_v32 = vpop.f32.mrb[23].mxu1 }
 0x28d   : > { %v2034_v33 = vpop.f32.mrb[20].mxu0 }
 0x28e   : > { %v2035_v35 = vadd.f32 %v2034_v33, %v1959_v31  ;;  %v4799_v36 = vpop.f32.mrb[21].mxu0 }
 0x290   : > { %v2110_v37 = vadd.f32 %v2109_v24, %v2035_v35 }
 0x291   : > { %v2186_v39 = vpop.f32.mrb[22].mxu0 }
 0x292   : > { %v2187_v41 = vadd.f32 %v2186_v39, %v2110_v37  ;;  %v4813_v43 = vpop.f32.mrb[23].mxu0 }
 0x294   : > { %v2260_v45 = vadd.f32 %v2259_v30, %v2187_v41 }
 0x296   : > { %v6041_v47 = vadd.f32 %v5969_v38, %v2260_v45 }
 0x298   : > { %v2289_v48 = vsel %vm335_vm1, %v6041_v47, 0  ;;  %v2264_v49 = vsel %vm1288_vm4, %v6041_v47, -inf }
 0x299   : > { %2265 = vmax.xlane.f32.xlu0 %v2264_v49  ;;  %v2360_v52 = vand.u32 4294901760, %v2289_v48 }
 0x29b   : > { %4841 = vmatmul.mubr.f32.vlgmr.msra.gmra.mrb[24].mxu1 %v2360_v52  ;;  %v2361_v53 = vsub.f32 %v2289_v48, %v2360_v52 }
 0x29c   : > { %5165 = vmatpush3.bf16.msra.mxu1 %v5855_v13  ;;  %4862 = vmatprep.mubr.msk.f32.mxu1 %vm5588_vm2, %v5589_v11 }
 0x29d   : > { %5166 = vmatprep.subr.bf16.mxu1 %v5587_v4  ;;  %v2362_v56 = vand.u32 4294901760, %v2361_v53 }
 0x29f   : > { %v2363_v59 = vsub.f32 %v2361_v53, %v2362_v56 }
 0x2a0   : > { %5168 = vmatpush3.bf16.msra.mxu1 %v5860_v19 }
 0x2a1   : > { %5175 = vmatprep.subr.bf16.mxu1 %v5587_v4  ;;  %v2364_v44 = vand.u32 4294901760, %v2363_v59 }
 0x2a3   : > { %4863 = vmatmul.mubr.f32.vlgmr.msra.gmra.mrb[26].mxu1 %v2362_v56  ;;  %4830 = vmatmul.mubr.f32.vlgmr.msra.gmra.mrb[24].mxu0 %v2364_v44 }
 0x2a4   : > { %5159 = vmatpush3.bf16.msra.mxu0 %v5871_v34  ;;  %5177 = vmatpush3.bf16.msra.mxu1 %v5855_v13 }
 0x2a5   : > { %5160 = vmatprep.subr.bf16.mxu0 %v5587_v4  ;;  %5178 = vmatprep.subr.bf16.mxu1 %v5587_v4 }
 0x2a6   : > { %4851 = vmatprep.mubr.msk.f32.mxu0 %vm5588_vm2, %v5589_v11  ;;  %4884 = vmatprep.mubr.msk.f32.mxu1 %vm5588_vm2, %v5589_v11 }
 0x2a8   : > { %5162 = vmatpush3.bf16.msra.mxu0 %v5883_v46  ;;  %5180 = vmatpush3.bf16.msra.mxu1 %v5860_v19 }
 0x2a9   : > { %5169 = vmatprep.subr.bf16.mxu0 %v5587_v4  ;;  %5184 = vmatprep.subr.bf16.mxu1 %v5587_v4 }
 0x2ab   : > { %4852 = vmatmul.mubr.f32.vlgmr.msra.gmra.mrb[26].mxu0 %v2361_v53  ;;  %4885 = vmatmul.mubr.f32.vlgmr.msra.gmra.mrb[28].mxu1 %v2360_v52 }
 0x2ac   : > { %5171 = vmatpush3.bf16.msra.mxu0 %v5892_v50  ;;  %4873 = vmatprep.mubr.msk.f32.mxu0 %vm5588_vm2, %v5589_v11 }
 0x2ad   : > { %5172 = vmatprep.subr.bf16.mxu0 %v5587_v4  ;;  %5186 = vmatpush3.bf16.msra.mxu1 %v5925_v63 }
 0x2ae   : > { %4898 = vmatprep.mubr.msk.f32.mxu1 %vm5588_vm2, %v5589_v11  ;;  %5190 = vmatprep.subr.bf16.mxu1 %v5587_v4 }
 0x2af   : > { %1296 = vrot.lane.b32.xlu0 %v5346_v5, %s5590_s26 }
 0x2b0   : > { %5174 = vmatpush3.bf16.msra.mxu0 %v5900_v54  ;;  %4899 = vmatmul.mubr.f32.vlgmr.msra.gmra.mrb[30].mxu1 %v2846_v1 }
 0x2b1   : > { %5181 = vmatprep.subr.bf16.mxu0 %v5587_v4  ;;  %5192 = vmatpush3.bf16.msra.mxu1 %v5910_v58 }
 0x2b2   : > { %4912 = vmatprep.mubr.msk.f32.mxu1 %vm5588_vm2, %v5589_v11  ;;  %5196 = vmatprep.subr.bf16.mxu1 %v5587_v4 }
 0x2b3   : > { %4874 = vmatmul.mubr.f32.vlgmr.msra.gmra.mrb[28].mxu0 %v2360_v52 }
 0x2b4   : > { %5183 = vmatpush3.bf16.msra.mxu0 %v5910_v58  ;;  %4891 = vmatprep.mubr.msk.f32.mxu0 %vm5588_vm2, %v5589_v11 }
 0x2b5   : > { %5187 = vmatprep.subr.bf16.mxu0 %v5587_v4  ;;  %4913 = vmatmul.mubr.f32.vlgmr.msra.gmra.mrb[32].mxu1 %v2848_v3 }
 0x2b6   : > { %5198 = vmatpush3.bf16.msra.mxu1 %v5910_v58  ;;  %4926 = vmatprep.mubr.msk.f32.mxu1 %vm5588_vm2, %v5589_v11 }
 0x2b7   : > { %4892 = vmatmul.mubr.f32.vlgmr.msra.gmra.mrb[30].mxu0 %v2850_v7  ;;  %5205 = vmatprep.subr.bf16.mxu1 %v5587_v4 }
 0x2b8   : > { %5189 = vmatpush3.bf16.msra.mxu0 %v5917_v62  ;;  %4905 = vmatprep.mubr.msk.f32.mxu0 %vm5588_vm2, %v5589_v11 }
 0x2b9   : > { %5193 = vmatprep.subr.bf16.mxu0 %v5587_v4  ;;  %4927 = vmatmul.mubr.f32.vlgmr.msra.gmra.mrb[34].mxu1 %v2846_v1 }
 0x2ba   : > { %5207 = vmatpush3.bf16.msra.mxu1 %v5874_v40  ;;  %4948 = vmatprep.mubr.msk.f32.mxu1 %vm5588_vm2, %v5589_v11 }
 0x2bb   : > { %4906 = vmatmul.mubr.f32.vlgmr.msra.gmra.mrb[32].mxu0 %v2847_v2  ;;  %5208 = vmatprep.subr.bf16.mxu1 %v5587_v4  ;;  %v4401_v2 = vld [vmem:[%s5830_s14 + $0x18] sm:$0xff] }
 0x2bc   : > { %5195 = vmatpush3.bf16.msra.mxu0 %v5932_v0  ;;  %4919 = vmatprep.mubr.msk.f32.mxu0 %vm5588_vm2, %v5589_v11  ;;  %v3752_v5 = vsel %vm824_vm3, %v4401_v2, 0 }
 0x2bd   : > { %5199 = vmatprep.subr.bf16.mxu0 %v5587_v4  ;;  %v3821_v7 = vand.u32 4294901760, %v3752_v5 }
 0x2be   : > { %5210 = vmatpush3.bf16.msra.mxu1 %v5877_v42 }
 0x2bf   : > { %4920 = vmatmul.mubr.f32.vlgmr.msra.gmra.mrb[34].mxu0 %v2846_v1  ;;  %5217 = vmatprep.subr.bf16.mxu1 %v5587_v4 }
 0x2c0   : > { %5201 = vmatpush3.bf16.msra.mxu0 %v5855_v13  ;;  %4937 = vmatprep.mubr.msk.f32.mxu0 %vm5588_vm2, %v5589_v11 }
 0x2c1   : > { %5202 = vmatprep.subr.bf16.mxu0 %v5587_v4 }
 0x2c4   : > { %5204 = vmatpush3.bf16.msra.mxu0 %v5860_v19 }
 0x2c5   : > { %5211 = vmatprep.subr.bf16.mxu0 %v5587_v4 }
 0x326   : > { %v6114_v40 = vpop.xlane.xlu0 %2265 }
 0x32a   : > { %v1297_v8 = vpop.permute.xlu0 %1296 }
 0x32b   : > { %v1300_v42 = vsel %vm1299_vm5, %v1297_v8, 0.0  ;;  %v3822_v8 = vsub.f32 %v3752_v5, %v3821_v7 }
 0x32c   : > { %1301 = vadd.xlane.f32.xlu0 %v1300_v42 }
 0x36e   : > { %v2457_v9 = vpop.f32.mrb[24].mxu1 }
 0x36f   : > { %v4842_v10 = vpop.f32.mrb[25].mxu1 }
 0x376   : > { %v2614_v12 = vpop.f32.mrb[26].mxu1  ;;  %v2366_v14 = vpop.f32.mrb[24].mxu0 }
 0x377   : > { %v2458_v15 = vadd.f32 %v2457_v9, %v2366_v14  ;;  %v4864_v16 = vpop.f32.mrb[27].mxu1  ;;  %v4831_v17 = vpop.f32.mrb[25].mxu0 }
 0x37e   : > { %v2537_v18 = vpop.f32.mrb[26].mxu0  ;;  %v2772_v20 = vpop.f32.mrb[28].mxu1 }
 0x37f   : > { %v2538_v21 = vadd.f32 %v2537_v18, %v2458_v15  ;;  %v4853_v22 = vpop.f32.mrb[27].mxu0  ;;  %v4886_v23 = vpop.f32.mrb[29].mxu1 }
 0x381   : > { %v2615_v24 = vadd.f32 %v2614_v12, %v2538_v21 }
 0x383   : > { %v2933_v25 = vpop.f32.mrb[30].mxu1 }
 0x384   : > { %v4900_v26 = vpop.f32.mrb[31].mxu1 }
 0x386   : > { %v2697_v27 = vpop.f32.mrb[28].mxu0 }
 0x387   : > { %v2698_v28 = vadd.f32 %v2697_v27, %v2615_v24  ;;  %v4875_v29 = vpop.f32.mrb[29].mxu0 }
 0x388   : > { %v3084_v30 = vpop.f32.mrb[32].mxu1 }
 0x389   : > { %v2773_v31 = vadd.f32 %v2772_v20, %v2698_v28  ;;  %v4914_v32 = vpop.f32.mrb[33].mxu1 }
 0x38a   : > { %v2852_v33 = vpop.f32.mrb[30].mxu0 }
 0x38b   : > { %v2853_v35 = vadd.f32 %v2852_v33, %v2773_v31  ;;  %v4893_v36 = vpop.f32.mrb[31].mxu0 }
 0x38c   : > { %v3234_v37 = vpop.f32.mrb[34].mxu1 }
 0x38d   : > { %v2934_v39 = vadd.f32 %v2933_v25, %v2853_v35  ;;  %v4928_v41 = vpop.f32.mrb[35].mxu1 }
 0x38e   : > { %v3009_v43 = vpop.f32.mrb[32].mxu0  ;;  %v2267_v41 = vsub.f32 %v6041_v47, %v6114_v40 }
 0x38f   : > { %v3010_v45 = vadd.f32 %v3009_v43, %v2934_v39  ;;  %v4907_v48 = vpop.f32.mrb[33].mxu0 }
 0x390   : > { %v2268_v48 = vmul.f32 1.442695, %v2267_v41 }
 0x391   : > { %v3085_v49 = vadd.f32 %v3084_v30, %v3010_v45 }
 0x392   : > { %v3161_v51 = vpop.f32.mrb[34].mxu0  ;;  %5347 = vpow2.f32 %v2268_v48 }
 0x393   : > { %v3162_v52 = vadd.f32 %v3161_v51, %v3085_v49  ;;  %v4921_v53 = vpop.f32.mrb[35].mxu0 }
 0x395   : > { %v3235_v56 = vadd.f32 %v3234_v37, %v3162_v52 }
 0x397   : > { %v6118_v57 = vadd.f32 %v5969_v38, %v3235_v56 }
 0x399   : > { %v3264_v59 = vsel %vm335_vm1, %v6118_v57, 0  ;;  %v3239_v60 = vsel %vm1288_vm4, %v6118_v57, -inf }
 0x39a   : > { %3240 = vmax.xlane.f32.xlu1 %v3239_v60  ;;  %v3335_v61 = vand.u32 4294901760, %v3264_v59 }
 0x39c   : > { %4949 = vmatmul.mubr.f32.vlgmr.msra.gmra.mrb[36].mxu1 %v3335_v61  ;;  %v3336_v44 = vsub.f32 %v3264_v59, %v3335_v61  ;;  %v5348_v52 = vpop.eup %5347 }
 0x39d   : > { %5219 = vmatpush3.bf16.msra.mxu1 %v5855_v13  ;;  %4970 = vmatprep.mubr.msk.f32.mxu1 %vm5588_vm2, %v5589_v11 }
 0x39e   : > { %5220 = vmatprep.subr.bf16.mxu1 %v5587_v4  ;;  %v3337_v1 = vand.u32 4294901760, %v3336_v44 }
 0x3a0   : > { %v3338_v3 = vsub.f32 %v3336_v44, %v3337_v1 }
 0x3a1   : > { %5222 = vmatpush3.bf16.msra.mxu1 %v5860_v19 }
 0x3a2   : > { %5229 = vmatprep.subr.bf16.mxu1 %v5587_v4  ;;  %v3339_v6 = vand.u32 4294901760, %v3338_v3 }
 0x3a4   : > { %4971 = vmatmul.mubr.f32.vlgmr.msra.gmra.mrb[38].mxu1 %v3337_v1  ;;  %4938 = vmatmul.mubr.f32.vlgmr.msra.gmra.mrb[36].mxu0 %v3339_v6 }
 0x3a5   : > { %5213 = vmatpush3.bf16.msra.mxu0 %v5871_v34  ;;  %5231 = vmatpush3.bf16.msra.mxu1 %v5855_v13  ;;  %v3823_v13 = vand.u32 4294901760, %v3822_v8 }
 0x3a6   : > { %5214 = vmatprep.subr.bf16.mxu0 %v5587_v4  ;;  %5232 = vmatprep.subr.bf16.mxu1 %v5587_v4 }
 0x3a7   : > { %4959 = vmatprep.mubr.msk.f32.mxu0 %vm5588_vm2, %v5589_v11  ;;  %4992 = vmatprep.mubr.msk.f32.mxu1 %vm5588_vm2, %v5589_v11 }
 0x3a9   : > { %5216 = vmatpush3.bf16.msra.mxu0 %v5883_v46  ;;  %5234 = vmatpush3.bf16.msra.mxu1 %v5860_v19  ;;  %v3824_v19 = vsub.f32 %v3822_v8, %v3823_v13 }
 0x3aa   : > { %5223 = vmatprep.subr.bf16.mxu0 %v5587_v4  ;;  %5238 = vmatprep.subr.bf16.mxu1 %v5587_v4 }
 0x3ab   : > { %v3825_v34 = vand.u32 4294901760, %v3824_v19 }
 0x3ac   : > { %4960 = vmatmul.mubr.f32.vlgmr.msra.gmra.mrb[38].mxu0 %v3336_v44  ;;  %4993 = vmatmul.mubr.f32.vlgmr.msra.gmra.mrb[40].mxu1 %v3335_v61 }
 0x3ad   : > { %5225 = vmatpush3.bf16.msra.mxu0 %v5892_v50  ;;  %4981 = vmatprep.mubr.msk.f32.mxu0 %vm5588_vm2, %v5589_v11 }
 0x3ae   : > { %5226 = vmatprep.subr.bf16.mxu0 %v5587_v4  ;;  %5240 = vmatpush3.bf16.msra.mxu1 %v5925_v63 }
 0x3af   : > { %5006 = vmatprep.mubr.msk.f32.mxu1 %vm5588_vm2, %v5589_v11  ;;  %5244 = vmatprep.subr.bf16.mxu1 %v5587_v4 }
 0x3b1   : > { %5228 = vmatpush3.bf16.msra.mxu0 %v5900_v54  ;;  %5007 = vmatmul.mubr.f32.vlgmr.msra.gmra.mrb[42].mxu1 %v3821_v7 }
 0x3b2   : > { %5235 = vmatprep.subr.bf16.mxu0 %v5587_v4  ;;  %5246 = vmatpush3.bf16.msra.mxu1 %v5910_v58 }
 0x3b3   : > { %5020 = vmatprep.mubr.msk.f32.mxu1 %vm5588_vm2, %v5589_v11  ;;  %5250 = vmatprep.subr.bf16.mxu1 %v5587_v4 }
 0x3b4   : > { %4982 = vmatmul.mubr.f32.vlgmr.msra.gmra.mrb[40].mxu0 %v3335_v61 }
 0x3b5   : > { %5237 = vmatpush3.bf16.msra.mxu0 %v5910_v58  ;;  %4999 = vmatprep.mubr.msk.f32.mxu0 %vm5588_vm2, %v5589_v11 }
 0x3b6   : > { %5241 = vmatprep.subr.bf16.mxu0 %v5587_v4  ;;  %5021 = vmatmul.mubr.f32.vlgmr.msra.gmra.mrb[44].mxu1 %v3823_v13 }
 0x3b7   : > { %5252 = vmatpush3.bf16.msra.mxu1 %v5910_v58  ;;  %5034 = vmatprep.mubr.msk.f32.mxu1 %vm5588_vm2, %v5589_v11 }
 0x3b8   : > { %5000 = vmatmul.mubr.f32.vlgmr.msra.gmra.mrb[42].mxu0 %v3825_v34 }
 0x3b9   : > { %5243 = vmatpush3.bf16.msra.mxu0 %v5917_v62  ;;  %5013 = vmatprep.mubr.msk.f32.mxu0 %vm5588_vm2, %v5589_v11  ;;  %v1302_v47 = vpop.xlane.xlu0 %1301 }
 0x3ba   : > { %5247 = vmatprep.subr.bf16.mxu0 %v5587_v4  ;;  %5035 = vmatmul.mubr.f32.vlgmr.msra.gmra.mrb[46].mxu1 %v3821_v7 }
 0x3bc   : > { %5014 = vmatmul.mubr.f32.vlgmr.msra.gmra.mrb[44].mxu0 %v3822_v8 }
 0x3bd   : > { %5249 = vmatpush3.bf16.msra.mxu0 %v5932_v0  ;;  %5027 = vmatprep.mubr.msk.f32.mxu0 %vm5588_vm2, %v5589_v11 }
 0x3c0   : > { %5028 = vmatmul.mubr.f32.vlgmr.msra.gmra.mrb[46].mxu0 %v3821_v7 }
 0x427   : > { %v3241_v43 = vpop.xlane.xlu1 %3240 }
 0x428   : > { %v3242_v49 = vsub.f32 %v6118_v57, %v3241_v43 }
 0x42a   : > { %v3243_v51 = vmul.f32 1.442695, %v3242_v49 }
 0x42c   : > { %5349 = vpow2.f32 %v3243_v51 }
 0x42d   : > { %5351 = vlog2.f32 %v1302_v47 }
 0x46f   : > { %v3432_v46 = vpop.f32.mrb[36].mxu1 }
 0x470   : > { %v4950_v50 = vpop.f32.mrb[37].mxu1 }
 0x477   : > { %v3589_v54 = vpop.f32.mrb[38].mxu1  ;;  %v3341_v58 = vpop.f32.mrb[36].mxu0 }
 0x478   : > { %v3433_v63 = vadd.f32 %v3432_v46, %v3341_v58  ;;  %v4972_v42 = vpop.f32.mrb[39].mxu1  ;;  %v4939_v62 = vpop.f32.mrb[37].mxu0 }
 0x47f   : > { %v3512_v9 = vpop.f32.mrb[38].mxu0  ;;  %v3747_v10 = vpop.f32.mrb[40].mxu1 }
 0x480   : > { %v3513_v12 = vadd.f32 %v3512_v9, %v3433_v63  ;;  %v4961_v14 = vpop.f32.mrb[39].mxu0  ;;  %v4994_v4 = vpop.f32.mrb[41].mxu1 }
 0x482   : > { %v3590_v15 = vadd.f32 %v3589_v54, %v3513_v12 }
 0x484   : > { %v3908_v16 = vpop.f32.mrb[42].mxu1 }
 0x485   : > { %v5008_v17 = vpop.f32.mrb[43].mxu1 }
 0x487   : > { %v3672_v0 = vpop.f32.mrb[40].mxu0 }
 0x488   : > { %v3673_v18 = vadd.f32 %v3672_v0, %v3590_v15  ;;  %v4983_v20 = vpop.f32.mrb[41].mxu0 }
 0x489   : > { %v4059_v11 = vpop.f32.mrb[44].mxu1 }
 0x48a   : > { %v3748_v21 = vadd.f32 %v3747_v10, %v3673_v18  ;;  %v5022_v22 = vpop.f32.mrb[45].mxu1 }
 0x48b   : > { %v3827_v23 = vpop.f32.mrb[42].mxu0 }
 0x48c   : > { %v3828_v24 = vadd.f32 %v3827_v23, %v3748_v21  ;;  %v5001_v25 = vpop.f32.mrb[43].mxu0 }
 0x48d   : > { %v4209_v26 = vpop.f32.mrb[46].mxu1 }
 0x48e   : > { %v3909_v27 = vadd.f32 %v3908_v16, %v3828_v24  ;;  %v5036_v28 = vpop.f32.mrb[47].mxu1 }
 0x48f   : > { %v3984_v29 = vpop.f32.mrb[44].mxu0 }
 0x490   : > { %v3985_v30 = vadd.f32 %v3984_v29, %v3909_v27  ;;  %v5015_v31 = vpop.f32.mrb[45].mxu0 }
 0x492   : > { %v4060_v32 = vadd.f32 %v4059_v11, %v3985_v30 }
 0x493   : > { %v4136_v33 = vpop.f32.mrb[46].mxu0 }
 0x494   : > { %v4137_v35 = vadd.f32 %v4136_v33, %v4060_v32  ;;  %v5029_v36 = vpop.f32.mrb[47].mxu0 }
 0x496   : > { %v4210_v37 = vadd.f32 %v4209_v26, %v4137_v35 }
 0x498   : > { %v6173_v39 = vadd.f32 %v5969_v38, %v4210_v37  ;;  %v5350_v38 = vpop.eup %5349 }
 0x499   : > { %v5352_v61 = vpop.eup %5351 }
 0x49a   : > { %4236 = vst.msk [vmem:[#allocation2] sm:$0xff] %vm335_vm1, %v6173_v39  ;;  %v4214_v45 = vsel %vm1288_vm4, %v6173_v39, -inf  ;;  %v1304_v44 = vmul.f32 0.6931472, %v5352_v61  ;;  %4241 = vst.msk [vmem:[#allocation12] sm:$0xff] (!%p4403_p4), %vm335_vm1, %v6173_v39 }
 0x49b   : > { %4215 = vmax.xlane.f32.xlu1 %v4214_v45 }
 0x49c   : > { %v1305_v2 = vsub.f32 %v6048_v55, %v1304_v44 }
 0x4ac   : > { %2271 = vrot.lane.b32.xlu1 %v5348_v52, %s5590_s26 }
 0x4b0   : > { %3246 = vrot.lane.b32.xlu1 %v5350_v38, %s5590_s26 }
 0x528   : > { %v4216_v40 = vpop.xlane.xlu1 %4215 }
 0x529   : > { %v4217_v53 = vsub.f32 %v6173_v39, %v4216_v40 }
 0x52b   : > { %v4218_v56 = vmul.f32 1.442695, %v4217_v53 }
 0x52c   : > { %v2272_v59 = vpop.permute.xlu1 %2271 }
 0x52d   : > { %5353 = vpow2.f32 %v4218_v56  ;;  %v2274_v3 = vsel %vm1299_vm5, %v2272_v59, 0.0 }
 0x530   : > { %v3247_v60 = vpop.permute.xlu1 %3246 }
 0x531   : > { %v3249_v57 = vsel %vm1299_vm5, %v3247_v60, 0.0 }
 0x532   : > { %3250 = vadd.xlane.f32.xlu0 %v3249_v57 }
 0x537   : > { %v5354_v1 = vpop.eup %5353 }
 0x538   : > { %4221 = vrot.lane.b32.xlu1 %v5354_v1, %s5590_s26 }
 0x53c   : > { %1307 = vrot.lane.b32.xlu1 %v1305_v2, %s5590_s26 }
 0x560   : > { %2275 = vadd.xlane.f32.xlu1 %v2274_v3 }
 0x5aa   : > { %v4222_v5 = vpop.permute.xlu1 %4221 }
 0x5ab   : > { %v4224_v6 = vsel %vm1299_vm5, %v4222_v5, 0.0 }
 0x5ac   : > { %4225 = vadd.xlane.f32.xlu0 %v4224_v6 }
 0x5ae   : > { %v1308_v7 = vpop.permute.xlu1 %1307 }
 0x5af   : > { %1310 = vst.msk [vmem:[%s5844_s29] sm:$0xff] %vm1299_vm5, %v1308_v7 }
 0x5bf   : > { %v3251_v8 = vpop.xlane.xlu0 %3250 }
 0x5c0   : > { %5355 = vlog2.f32 %v3251_v8 }
 0x5ca   : > { %v5356_v13 = vpop.eup %5355 }
 0x5cb   : > { %v3253_v19 = vmul.f32 0.6931472, %v5356_v13 }
 0x5cd   : > { %v3254_v34 = vsub.f32 %v3242_v49, %v3253_v19 }
 0x5cf   : > { %3256 = vrot.lane.b32.xlu1 %v3254_v34, %s5590_s26 }
 0x5ed   : > { %v2276_v55 = vpop.xlane.xlu1 %2275 }
 0x5ee   : > { %5357 = vlog2.f32 %v2276_v55 }
 0x5f8   : > { %v5358_v46 = vpop.eup %5357 }
 0x5f9   : > { %v2278_v50 = vmul.f32 0.6931472, %v5358_v46 }
 0x5fb   : > { %v2279_v54 = vsub.f32 %v2267_v41, %v2278_v50 }
 0x5fd   : > { %2281 = vrot.lane.b32.xlu0 %v2279_v54, %s5590_s26 }
 0x639   : > { %v4226_v58 = vpop.xlane.xlu0 %4225 }
 0x63a   : > { %5359 = vlog2.f32 %v4226_v58 }
 0x641   : > { %v3257_v63 = vpop.permute.xlu1 %3256 }
 0x642   : > { %4400 = vst.msk [vmem:[%s5844_s29 + $0x10] sm:$0xff] %vm1299_vm5, %v3257_v63 }
 0x644   : > { %v5360_v42 = vpop.eup %5359 }
 0x645   : > { %v4228_v62 = vmul.f32 0.6931472, %v5360_v42 }
 0x647   : > { %v4229_v9 = vsub.f32 %v4217_v53, %v4228_v62 }
 0x649   : > { %4231 = vrot.lane.b32.xlu1 %v4229_v9, %s5590_s26 }
 0x66f   : > { %v2282_v10 = vpop.permute.xlu0 %2281 }
 0x670   : > { %4398 = vst.msk [vmem:[%s5844_s29 + $0x8] sm:$0xff] %vm1299_vm5, %v2282_v10 }
 0x6b6   : > { %4240 = sbr.rel (%p4403_p4) target bundleno = 1725 (0x6bd), region = 64 }
 0x6bb   : > { %v4232_v12 = vpop.permute.xlu1 %4231 }
 0x6bc   : > { %4402 = vst.msk [vmem:[%s5844_s29 + $0x18] sm:$0xff] %vm1299_vm5, %v4232_v12 }
 0x6bd PF: > { %s4412_s19 = sshll.u32 %s5651_s25, 9  ;;  %s4256_s15 = sshll.u32 %s5844_s29, 4  ;;  %s6212_s15 = int_to_ptr.vmem [resolvable:$true] %s4256_s15 }
 0x6be   : > { %s6209_s10 = scalar_lea.hbm %s6283_s5, %s4412_s19  ;;  %s4243_s12 = scalar_lea.sflag [#allocation5], %s5826_s8 }
 0x6bf   : > { %s5475_s17 = scalar_lea.vmem %s6212_s15, 512  ;;  %s5591_s16 = smov [#allocation11]  }
 0x6c0   : > { %p5476_p9 = scmp.ne.s32.totalorder %s6212_s15, %s5475_s17  ;;  %s5479_s7 = sshll.u32 %s5591_s16, 4  ;;  %s5480_s7 = int_to_ptr.vmem [resolvable:$false] %s5479_s7 }
 0x6c1   : > { %s5481_s14 = scalar_lea.vmem %s5480_s7, 1024  ;;  %p5482_p11 = scmp.lt.s32.totalorder %s6212_s15, %s5480_s7 }
 0x6c2   : > { %p5477_p3 = pnand %p5476_p9, %p5775_p6  ;;  %p5483_p0 = scmp.lt.s32.totalorder %s5481_s14, %s5475_s17 }
 0x6c4   : > { %p5478_p7 = pneg %p5477_p3  ;;  %p5484_p13 = por %p5483_p0, %p5482_p11 }
 0x6c6   : > { %p5485_p5 = pnand %p5484_p13, %p5478_p7 }
 0x6c8   : > { %5488 = shalt.err (!%p5485_p5)
}
 0x6c9   : > { %s5489_s29 = scalar_lea.hbm %s6209_s10, 512  ;;  %s5493_s26 = scalar_lea.hbm %s6283_s5, 1024 }
 0x6ca   : > { %p5490_p12 = scmp.ne.s32.totalorder %s6209_s10, %s5489_s29  ;;  %p5494_p2 = scmp.lt.u32.totalorder %s6209_s10, %s6283_s5 }
 0x6cb   : > { %p5495_p1 = scmp.lt.u32.totalorder %s5493_s26, %s5489_s29  ;;  %p5497_p9 = scmp.lt.u32.totalorder %s5489_s29, %s6209_s10 }
 0x6cc   : > { %p5491_p8 = pnand %p5490_p12, %p5775_p6 }
 0x6cd   : > { %p5496_p4 = por %p5495_p1, %p5494_p2 }
 0x6ce   : > { %p5492_p10 = pneg %p5491_p8 }
 0x6cf   : > { %p5498_p3 = por %p5497_p9, %p5496_p4 }
 0x6d1   : > { %p5499_p7 = pnand %p5498_p3, %p5492_p10 }
 0x6d3   : > { %5502 = shalt.err (!%p5499_p7)
}
 0x6d4   : > { %s5592_s30 = smov 128   ;;  %s5593_s17 = smov 8  }
 0x6d5   : > { %5267 = dma.vmem_to_hbm [thread:$0]  (%p5775_p6), %s6212_s15, 512, %s6209_s10, %s4243_s12, %s5592_s30, %s5592_s30, %s5593_s17  }
 0x6d6   : > { %s5594_s16 = smov [#allocation12]   ;;  %p6303_p0 = scmp.eq.s32.totalorder %s5651_s25, 1 }
 0x6d7   : > { %s4270_s7 = sshll.u32 %s5594_s16, 4  ;;  %s4271_s7 = int_to_ptr.vmem [resolvable:$true] %s4270_s7 }
 0x6d8   : > { %s5503_s14 = scalar_lea.vmem %s4271_s7, 128  ;;  %p5510_p12 = scmp.lt.s32.totalorder %s4271_s7, %s4271_s7 }
 0x6d9   : > { %p5504_p11 = scmp.ne.s32.totalorder %s4271_s7, %s5503_s14  ;;  %p5511_p8 = scmp.lt.s32.totalorder %s5503_s14, %s5503_s14 }
 0x6db   : > { %p5505_p13 = pnand %p5504_p11, %p6303_p0  ;;  %p5512_p10 = por %p5511_p8, %p5510_p12 }
 0x6dd   : > { %p5506_p5 = pneg %p5505_p13 }
 0x6df   : > { %p5513_p2 = pnand %p5512_p10, %p5506_p5 }
 0x6e1   : > { %5516 = shalt.err (!%p5513_p2)
}
 0x6e2   : > { %s5517_s13 = scalar_lea.hbm %s6284_s6, 128  ;;  %p6304_p1 = pmov %p6303_p0 }
 0x6e3   : > { %p5518_p6 = scmp.ne.s32.totalorder %s6284_s6, %s5517_s13  ;;  %p5523_p3 = scmp.lt.u32.totalorder %s5517_s13, %s6284_s6 }
 0x6e5   : > { %p5519_p4 = pnand %p5518_p6, %p6304_p1 }
 0x6e7   : > { %p5520_p9 = pneg %p5519_p4 }
 0x6e9   : > { %p5525_p7 = pnand %p5523_p3, %p5520_p9 }
 0x6eb   : > { %5528 = shalt.err (!%p5525_p7)
}
 0x6ec   : > { %p6305_p11 = pmov %p6303_p0 }
 0x6ee   : > { %5269 = dma.vmem_to_hbm [thread:$0]  (%p6305_p11), %s4271_s7, 128, %s6284_s6, [#allocation13]  }
 0x6ef   : > { %5558 = dma.done.wait (%p6303_p0), [#allocation13], 128   ;;  %p6306_p13 = pmov %p6303_p0 }
 0x6f1   : > { %5560 = vsyncadd (%p6306_p13), [#allocation13], 4294967168 }
 0x6f2 PF: > { %s4286_s19 = sand.u32 1, %s5567_s21   ;;  %p6307_p5 = scmp.ne.s32.totalorder %s6289_s28, 0 }
 0x6f3   : > { %p6308_p12 = scmp.ge.s32.totalorder %s5579_s24, 2  ;;  %s4287_s9 = scalar_lea.sflag [#allocation5], %s4286_s19 }
 0x6f5   : > { %p5288_p8 = pnand %p6308_p12, %p6307_p5 }
 0x6f7   : > { %5562 = dma.done.wait (!%p5288_p8), %s4287_s9, 512  }
 0x6f8   : > { %5564 = vsyncadd (!%p5288_p8), %s4287_s9, 4294966784  ;;  %p23_p10 = scmp.ge.s32.totalorder %s5761_s18, 4   ;;  %s6309_s21 = smov %s5571_s22 }
 0x6f9   : > { %s6310_s22 = smov %s5575_s23  ;;  %s6311_s23 = smov %s5771_s11 }
 0x6fa   : > { %s6312_s24 = smov %s5761_s18  ;;  %25 = sbr.rel (!%p23_p10) target bundleno = 8 (0x8), region = 119 }
 0x701   :  { %4292 = vsyncpa [#allocation4], 1 }
 0x702   :  { %4294 = vsyncpa [#allocation4 + $0x1], 1 }
 0x703   :  { %4295 = vsyncpa [#allocation7], 1 }
 0x704   :  { %4296 = vsyncpa [#allocation10], 1 }
 0x705   :  { %4297 = vsyncpa [#allocation5], 1 }
 0x706   :  { %4299 = vsyncpa [#allocation5 + $0x1], 1 }
 0x707   :  { %4300 = vsyncpa [#allocation13], 1 }

</bundles_post_ra>
